<compile_context>
chip_gen: v7x
topology: tpu7x:2x2x1
jax: 0.10.0
libtpu: 0.0.40
codegen_flags: <defaults>
</compile_context>

<pallas_src>
import numpy as np
import jax
import jax.numpy as jnp
from jax.experimental import pallas as pl
from jax.experimental.pallas import tpu as pltpu


_VMEM_LIMIT = 32 * 1024 * 1024  # explicit budget; safe on v5e/v6e (128 MiB) and v7x (64 MiB)


# ---------------------------------------------------------------------------
# Pallas kernels
# ---------------------------------------------------------------------------

def _conv_tanh_pool_kernel(x_ref, s_ref, a_ref, b_ref, pl_ref, pr_ref, o_ref):
    """One image: 5x5 valid conv + bias + tanh + 2x2 avg-pool, all as 2-D matmuls.

    x_ref : (H, W*Cin)              image, (w, c) interleaved on lanes
    s_ref : (k, OH, H)              row-selection matrices (S[dy] @ x == x[dy:dy+OH])
    a_ref : (k, W*Cin, OW*Cout)     shifted conv weight matrices
    b_ref : (1, OW*Cout)            bias row
    pl_ref: (OH//2, OH)             row-pooling matrix (0.5 entries)
    pr_ref: (OW*Cout, OW//2*Cout)   column(+channel)-pooling matrix (0.5 entries)
    o_ref : (OH//2, (OW//2)*Cout)   pooled activation
    """
    k = s_ref.shape[0]
    x = x_ref[...]
    acc = jnp.zeros((s_ref.shape[1], a_ref.shape[2]), jnp.float32)
    for dy in range(k):  # static unroll (k == 5); every op is an aligned 2-D matmul
        rows = jnp.dot(s_ref[dy], x, preferred_element_type=jnp.float32)
        acc = acc + jnp.dot(rows, a_ref[dy], preferred_element_type=jnp.float32)
    y = jnp.tanh(acc + b_ref[...])                              # f32 epilogue (v5e-safe)
    pooled = jnp.dot(pl_ref[...], y, preferred_element_type=jnp.float32)
    pooled = jnp.dot(pooled, pr_ref[...], preferred_element_type=jnp.float32)
    o_ref[...] = pooled.astype(o_ref.dtype)


def _classifier_kernel(x_ref, w1_ref, b1_ref, w2_ref, b2_ref, w3_ref, b3_ref, o_ref):
    """Fused fc1 -> tanh -> fc2 -> tanh -> fc3 -> log_softmax on one (TM, 400) tile."""
    h = jnp.dot(x_ref[...], w1_ref[...], preferred_element_type=jnp.float32) + b1_ref[...]
    h = jnp.tanh(h)
    h = jnp.dot(h, w2_ref[...], preferred_element_type=jnp.float32) + b2_ref[...]
    h = jnp.tanh(h)
    logits = jnp.dot(h, w3_ref[...], preferred_element_type=jnp.float32) + b3_ref[...]
    m = jnp.max(logits, axis=-1, keepdims=True)
    s = logits - m
    lse = jnp.log(jnp.sum(jnp.exp(s), axis=-1, keepdims=True))
    o_ref[...] = (s - lse).astype(o_ref.dtype)


# ---------------------------------------------------------------------------
# pallas_call wrappers
# ---------------------------------------------------------------------------

def conv_tanh_pool(x2d, S, A, brow, PLm, PRm):
    """x2d: (N, H, W*Cin) -> (N, OH//2, (OW//2)*Cout); grid over images."""
    N, H, WC = x2d.shape
    k, OH, _ = S.shape
    OWC = A.shape[2]
    POH, POWC = PLm.shape[0], PRm.shape[1]

    flops = 2 * N * (k * (OH * H * WC + OH * WC * OWC)
                     + POH * OH * OWC + POH * OWC * POWC)
    bytes_accessed = 4 * (x2d.size + S.size + A.size + brow.size
                          + PLm.size + PRm.size + N * POH * POWC)

    return pl.pallas_call(
        _conv_tanh_pool_kernel,
        out_shape=jax.ShapeDtypeStruct((N, POH, POWC), jnp.float32),
        grid=(N,),
        in_specs=[
            pl.BlockSpec((None, H, WC), lambda b: (b, 0, 0)),     # per-image input tile
            pl.BlockSpec((k, OH, H), lambda b: (0, 0, 0)),        # resident constants
            pl.BlockSpec((k, WC, OWC), lambda b: (0, 0, 0)),
            pl.BlockSpec((1, OWC), lambda b: (0, 0)),
            pl.BlockSpec((POH, OH), lambda b: (0, 0)),
            pl.BlockSpec((OWC, POWC), lambda b: (0, 0)),
        ],
        out_specs=pl.BlockSpec((None, POH, POWC), lambda b: (b, 0, 0)),
        compiler_params=pltpu.CompilerParams(
            dimension_semantics=("parallel",),        # megacore sharding on v7x
            vmem_limit_bytes=_VMEM_LIMIT),
        cost_estimate=pl.CostEstimate(flops=flops,
                                      transcendentals=N * OH * OWC,
                                      bytes_accessed=bytes_accessed),
    )(x2d, S, A, brow, PLm, PRm)


def classifier_fused(x, W1, b1, W2, b2, W3, b3, tm_max=512):
    """(N, 400) -> (N, num_classes) log-probs; grid over M, weights resident in VMEM."""
    N, K = x.shape
    H1, H2, C = W1.shape[1], W2.shape[1], W3.shape[1]
    # M tile: full batch if small, otherwise 512 (multiple of 8).  VMEM budget:
    # 2*(TM*K + TM*C)*4 + weights (~0.2 MiB) << 32 MiB scoped limit on all chips.
    TM = N if N <= tm_max else tm_max
    grid = (pl.cdiv(N, TM),)

    flops = 2 * N * (K * H1 + H1 * H2 + H2 * C)
    bytes_accessed = 4 * (x.size + W1.size + W2.size + W3.size
                          + b1.size + b2.size + b3.size + N * C)

    return pl.pallas_call(
        _classifier_kernel,
        out_shape=jax.ShapeDtypeStruct((N, C), jnp.float32),
        grid=grid,
        in_specs=[
            pl.BlockSpec((TM, K), lambda i: (i, 0)),
            pl.BlockSpec((K, H1), lambda i: (0, 0)),   # pre-transposed, resident
            pl.BlockSpec((1, H1), lambda i: (0, 0)),
            pl.BlockSpec((H1, H2), lambda i: (0, 0)),
            pl.BlockSpec((1, H2), lambda i: (0, 0)),
            pl.BlockSpec((H2, C), lambda i: (0, 0)),
            pl.BlockSpec((1, C), lambda i: (0, 0)),
        ],
        out_specs=pl.BlockSpec((TM, C), lambda i: (i, 0)),
        compiler_params=pltpu.CompilerParams(
            dimension_semantics=("parallel",),
            vmem_limit_bytes=_VMEM_LIMIT),
        cost_estimate=pl.CostEstimate(flops=flops,
                                      transcendentals=N * (H1 + H2 + C),
                                      bytes_accessed=bytes_accessed),
    )(x, W1, b1, W2, b2, W3, b3)


# ---------------------------------------------------------------------------
# Parameter setup (PyTorch layout -> kernel-ready constants; done once)
# ---------------------------------------------------------------------------

def init_params(num_classes=10, seed=0):
    """PyTorch-convention LeNet parameters (same shapes/init scheme as the nn.Module)."""
    key = jax.random.PRNGKey(seed)
    ks = jax.random.split(key, 10)

    def uni(k, shape, fan_in):
        bound = 1.0 / float(np.sqrt(fan_in))
        return jax.random.uniform(k, shape, jnp.float32, -bound, bound)

    return {
        "conv1_w": uni(ks[0], (6, 1, 5, 5), 1 * 5 * 5),
        "conv1_b": uni(ks[1], (6,), 1 * 5 * 5),
        "conv2_w": uni(ks[2], (16, 6, 5, 5), 6 * 5 * 5),
        "conv2_b": uni(ks[3], (16,), 6 * 5 * 5),
        "fc1_w": uni(ks[4], (120, 400), 400),
        "fc1_b": uni(ks[5], (120,), 400),
        "fc2_w": uni(ks[6], (84, 120), 120),
        "fc2_b": uni(ks[7], (84,), 120),
        "fc3_w": uni(ks[8], (num_classes, 84), 84),
        "fc3_b": uni(ks[9], (num_classes,), 84),
    }


def _build_conv_constants(w, b, H, W):
    """Precompute shifted-row conv matrices, bias row and pooling matrices."""
    w = np.asarray(w, np.float32)            # (Cout, Cin, k, k), PyTorch layout
    b = np.asarray(b, np.float32)
    Cout, Cin, k, _ = w.shape
    OH, OW = H - k + 1, W - k + 1
    # Row selection: (S[dy] @ x)[i, :] == x[i + dy, :]
    S = np.zeros((k, OH, H), np.float32)
    for dy in range(k):
        S[dy, np.arange(OH), np.arange(OH) + dy] = 1.0
    # Shifted conv weights: A[dy][wi*Cin+ci, ow*Cout+co] = w[co, ci, dy, wi-ow]
    A = np.zeros((k, W * Cin, OW * Cout), np.float32)
    for dy in range(k):
        for dx in range(k):
            blk = w[:, :, dy, dx].T          # (Cin, Cout)
            for ow in range(OW):
                wi = ow + dx
                A[dy, wi * Cin:(wi + 1) * Cin, ow * Cout:(ow + 1) * Cout] = blk
    brow = np.tile(b, OW).reshape(1, OW * Cout)
    # 2x2 average pool as two matmuls: pooled = PL @ y @ PR
    PL_ = np.zeros((OH // 2, OH), np.float32)
    PL_[np.arange(OH) // 2, np.arange(OH)] = 0.5
    PR_ = np.zeros((OW * Cout, (OW // 2) * Cout), np.float32)
    for ow in range(OW):
        idx = np.arange(Cout)
        PR_[ow * Cout + idx, (ow // 2) * Cout + idx] = 0.5
    return tuple(jnp.asarray(m) for m in (S, A, brow, PL_, PR_))


def prepare_params(tp):
    """One-time conversion: pre-transposed FC weights (no .T in forward), flatten-order
    permutation, and conv/pool constant matrices."""
    S1, A1, b1r, PL1, PR1 = _build_conv_constants(tp["conv1_w"], tp["conv1_b"], 32, 32)
    S2, A2, b2r, PL2, PR2 = _build_conv_constants(tp["conv2_w"], tp["conv2_b"], 14, 14)
    # torch.flatten(NCHW) orders features as (c, h, w); our kernels flatten (h, w, c).
    fc1_w = np.asarray(tp["fc1_w"], np.float32)                          # (120, 400)
    W1 = fc1_w.reshape(-1, 16, 5, 5).transpose(2, 3, 1, 0).reshape(16 * 5 * 5, -1)
    W2 = np.asarray(tp["fc2_w"], np.float32).T
    W3 = np.asarray(tp["fc3_w"], np.float32).T
    return {
        "S1": S1, "A1": A1, "b1r": b1r, "PL1": PL1, "PR1": PR1,
        "S2": S2, "A2": A2, "b2r": b2r, "PL2": PL2, "PR2": PR2,
        "W1": jnp.asarray(W1), "fb1": jnp.asarray(tp["fc1_b"]).reshape(1, -1),
        "W2": jnp.asarray(W2), "fb2": jnp.asarray(tp["fc2_b"]).reshape(1, -1),
        "W3": jnp.asarray(W3), "fb3": jnp.asarray(tp["fc3_b"]).reshape(1, -1),
    }


# ---------------------------------------------------------------------------
# Forward pass (3 pallas_calls, no transposes / im2col / pooling glue)
# ---------------------------------------------------------------------------

def lenet_forward(kp, x):
    """x: (N, 1, 32, 32) NCHW float32 -> (N, num_classes) log-probabilities."""
    N, C, H, W = x.shape
    x2d = x.reshape(N, H, W * C)        # Cin == 1: already (H, W*Cin), no transpose
    h = conv_tanh_pool(x2d, kp["S1"], kp["A1"], kp["b1r"], kp["PL1"], kp["PR1"])  # (N,14,84)
    h = conv_tanh_pool(h, kp["S2"], kp["A2"], kp["b2r"], kp["PL2"], kp["PR2"])    # (N,5,80)
    flat = h.reshape(N, h.shape[1] * h.shape[2])   # row-major no-op; (h, w, c) order
    return classifier_fused(flat, kp["W1"], kp["fb1"], kp["W2"], kp["fb2"],
                            kp["W3"], kp["fb3"])


def lenet_reference(tp, x):
    """Pure-JAX re-implementation of the PyTorch module (correctness oracle)."""
    hi = jax.lax.Precision.HIGHEST

    def conv(y, w, b):
        y = jax.lax.conv_general_dilated(y, w, (1, 1), "VALID",
                                         dimension_numbers=("NCHW", "OIHW", "NCHW"),
                                         precision=hi)
        return jnp.tanh(y + b[None, :, None, None])

    def pool(y):
        n, c, hh, ww = y.shape
        return y.reshape(n, c, hh // 2, 2, ww // 2, 2).mean(axis=(3, 5))

    y = pool(conv(x, tp["conv1_w"], tp["conv1_b"]))
    y = pool(conv(y, tp["conv2_w"], tp["conv2_b"]))
    y = y.reshape(x.shape[0], -1)
    y = jnp.tanh(jnp.dot(y, tp["fc1_w"].T, precision=hi) + tp["fc1_b"])
    y = jnp.tanh(jnp.dot(y, tp["fc2_w"].T, precision=hi) + tp["fc2_b"])
    y = jnp.dot(y, tp["fc3_w"].T, precision=hi) + tp["fc3_b"]
    return jax.nn.log_softmax(y, axis=-1)


if __name__ == "__main__":
    key = jax.random.PRNGKey(0)
    # LeNet needs 32x32 single-channel input so that flatten yields 16*5*5.
    x = jax.random.normal(key, (2, 1, 32, 32), dtype=jnp.float32)
    tp = init_params(num_classes=10, seed=0)
    kp = prepare_params(tp)

    out = jax.jit(lenet_forward)(kp, x)
    out = jax.block_until_ready(out)

    assert out.shape == (2, 10)
    # log_softmax rows must sum (in prob space) to ~1
    assert bool(jnp.allclose(jnp.sum(jnp.exp(out), axis=-1), 1.0, atol=1e-4))
    # match a pure-JAX/XLA reference of the PyTorch forward (loose tol for MXU precision)
    ref = jax.jit(lenet_reference)(tp, x)
    assert bool(jnp.allclose(out, ref, atol=5e-2, rtol=5e-2)), \
        float(jnp.max(jnp.abs(out - ref)))
    print("KERNEL_OK")
</pallas_src>

<mosaic_0001>
module attributes {stable_mosaic.version = 11 : i64} {
  func.func @_conv_tanh_pool_kernel(%arg0: i32, %arg1: memref<1x14x84xf32, #tpu.memory_space<vmem>>, %arg2: memref<5x10x14xf32, #tpu.memory_space<vmem>>, %arg3: memref<5x84x160xf32, #tpu.memory_space<vmem>>, %arg4: memref<1x160xf32, #tpu.memory_space<vmem>>, %arg5: memref<5x10xf32, #tpu.memory_space<vmem>>, %arg6: memref<160x80xf32, #tpu.memory_space<vmem>>, %arg7: memref<1x5x80xf32, #tpu.memory_space<vmem>>) attributes {dimension_semantics = [#tpu.dimension_semantics<parallel>], iteration_bounds = array<i64: 2>, scalar_prefetch = 0 : i64, scratch_operands = 0 : i64, tpu.core_type = #tpu.core_type<tc>, window_params = [{transform_indices = @transform_0, window_bounds = array<i64: 1, 14, 84>}, {pipeline_mode = #tpu.pipeline_mode<synchronous>, transform_indices = @transform_1, window_bounds = array<i64: 5, 10, 14>}, {pipeline_mode = #tpu.pipeline_mode<synchronous>, transform_indices = @transform_2, window_bounds = array<i64: 5, 84, 160>}, {pipeline_mode = #tpu.pipeline_mode<synchronous>, transform_indices = @transform_3, window_bounds = array<i64: 1, 160>}, {pipeline_mode = #tpu.pipeline_mode<synchronous>, transform_indices = @transform_4, window_bounds = array<i64: 5, 10>}, {pipeline_mode = #tpu.pipeline_mode<synchronous>, transform_indices = @transform_5, window_bounds = array<i64: 160, 80>}, {transform_indices = @transform_6, window_bounds = array<i64: 1, 5, 80>}]} {
    %c0 = arith.constant 0 : index
    %c0_0 = arith.constant 0 : index
    %c0_1 = arith.constant 0 : index
    %0 = vector.load %arg1[%c0, %c0_0, %c0_1] : memref<1x14x84xf32, #tpu.memory_space<vmem>>, vector<1x14x84xf32>
    %1 = vector.shape_cast %0 : vector<1x14x84xf32> to vector<14x84xf32>
    %cst = arith.constant 0.000000e+00 : f32
    %2 = vector.broadcast %cst : f32 to vector<10x160xf32>
    %c0_2 = arith.constant 0 : index
    %c0_3 = arith.constant 0 : index
    %c0_4 = arith.constant 0 : index
    %3 = vector.load %arg2[%c0_2, %c0_3, %c0_4] : memref<5x10x14xf32, #tpu.memory_space<vmem>>, vector<1x10x14xf32>
    %4 = vector.shape_cast %3 : vector<1x10x14xf32> to vector<10x14xf32>
    %cst_5 = arith.constant dense<0.000000e+00> : vector<10x84xf32>
    %5 = tpu.matmul %4, %1, %cst_5 {dimension_numbers = #tpu.dot_dimension_numbers<[1], [0], [0], [1], [0, 0, 1, 1], [], []>} : vector<10x14xf32>, vector<14x84xf32>, vector<10x84xf32> -> vector<10x84xf32>
    %c0_6 = arith.constant 0 : index
    %c0_7 = arith.constant 0 : index
    %c0_8 = arith.constant 0 : index
    %6 = vector.load %arg3[%c0_6, %c0_7, %c0_8] : memref<5x84x160xf32, #tpu.memory_space<vmem>>, vector<1x84x160xf32>
    %7 = vector.shape_cast %6 : vector<1x84x160xf32> to vector<84x160xf32>
    %cst_9 = arith.constant dense<0.000000e+00> : vector<10x160xf32>
    %8 = tpu.matmul %5, %7, %cst_9 {dimension_numbers = #tpu.dot_dimension_numbers<[1], [0], [0], [1], [0, 0, 1, 1], [], []>} : vector<10x84xf32>, vector<84x160xf32>, vector<10x160xf32> -> vector<10x160xf32>
    %9 = arith.addf %2, %8 : vector<10x160xf32>
    %c1 = arith.constant 1 : index
    %c0_10 = arith.constant 0 : index
    %c0_11 = arith.constant 0 : index
    %10 = vector.load %arg2[%c1, %c0_10, %c0_11] : memref<5x10x14xf32, #tpu.memory_space<vmem>>, vector<1x10x14xf32>
    %11 = vector.shape_cast %10 : vector<1x10x14xf32> to vector<10x14xf32>
    %cst_12 = arith.constant dense<0.000000e+00> : vector<10x84xf32>
    %12 = tpu.matmul %11, %1, %cst_12 {dimension_numbers = #tpu.dot_dimension_numbers<[1], [0], [0], [1], [0, 0, 1, 1], [], []>} : vector<10x14xf32>, vector<14x84xf32>, vector<10x84xf32> -> vector<10x84xf32>
    %c1_13 = arith.constant 1 : index
    %c0_14 = arith.constant 0 : index
    %c0_15 = arith.constant 0 : index
    %13 = vector.load %arg3[%c1_13, %c0_14, %c0_15] : memref<5x84x160xf32, #tpu.memory_space<vmem>>, vector<1x84x160xf32>
    %14 = vector.shape_cast %13 : vector<1x84x160xf32> to vector<84x160xf32>
    %cst_16 = arith.constant dense<0.000000e+00> : vector<10x160xf32>
    %15 = tpu.matmul %12, %14, %cst_16 {dimension_numbers = #tpu.dot_dimension_numbers<[1], [0], [0], [1], [0, 0, 1, 1], [], []>} : vector<10x84xf32>, vector<84x160xf32>, vector<10x160xf32> -> vector<10x160xf32>
    %16 = arith.addf %9, %15 : vector<10x160xf32>
    %c2 = arith.constant 2 : index
    %c0_17 = arith.constant 0 : index
    %c0_18 = arith.constant 0 : index
    %17 = vector.load %arg2[%c2, %c0_17, %c0_18] : memref<5x10x14xf32, #tpu.memory_space<vmem>>, vector<1x10x14xf32>
    %18 = vector.shape_cast %17 : vector<1x10x14xf32> to vector<10x14xf32>
    %cst_19 = arith.constant dense<0.000000e+00> : vector<10x84xf32>
    %19 = tpu.matmul %18, %1, %cst_19 {dimension_numbers = #tpu.dot_dimension_numbers<[1], [0], [0], [1], [0, 0, 1, 1], [], []>} : vector<10x14xf32>, vector<14x84xf32>, vector<10x84xf32> -> vector<10x84xf32>
    %c2_20 = arith.constant 2 : index
    %c0_21 = arith.constant 0 : index
    %c0_22 = arith.constant 0 : index
    %20 = vector.load %arg3[%c2_20, %c0_21, %c0_22] : memref<5x84x160xf32, #tpu.memory_space<vmem>>, vector<1x84x160xf32>
    %21 = vector.shape_cast %20 : vector<1x84x160xf32> to vector<84x160xf32>
    %cst_23 = arith.constant dense<0.000000e+00> : vector<10x160xf32>
    %22 = tpu.matmul %19, %21, %cst_23 {dimension_numbers = #tpu.dot_dimension_numbers<[1], [0], [0], [1], [0, 0, 1, 1], [], []>} : vector<10x84xf32>, vector<84x160xf32>, vector<10x160xf32> -> vector<10x160xf32>
    %23 = arith.addf %16, %22 : vector<10x160xf32>
    %c3 = arith.constant 3 : index
    %c0_24 = arith.constant 0 : index
    %c0_25 = arith.constant 0 : index
    %24 = vector.load %arg2[%c3, %c0_24, %c0_25] : memref<5x10x14xf32, #tpu.memory_space<vmem>>, vector<1x10x14xf32>
    %25 = vector.shape_cast %24 : vector<1x10x14xf32> to vector<10x14xf32>
    %cst_26 = arith.constant dense<0.000000e+00> : vector<10x84xf32>
    %26 = tpu.matmul %25, %1, %cst_26 {dimension_numbers = #tpu.dot_dimension_numbers<[1], [0], [0], [1], [0, 0, 1, 1], [], []>} : vector<10x14xf32>, vector<14x84xf32>, vector<10x84xf32> -> vector<10x84xf32>
    %c3_27 = arith.constant 3 : index
    %c0_28 = arith.constant 0 : index
    %c0_29 = arith.constant 0 : index
    %27 = vector.load %arg3[%c3_27, %c0_28, %c0_29] : memref<5x84x160xf32, #tpu.memory_space<vmem>>, vector<1x84x160xf32>
    %28 = vector.shape_cast %27 : vector<1x84x160xf32> to vector<84x160xf32>
    %cst_30 = arith.constant dense<0.000000e+00> : vector<10x160xf32>
    %29 = tpu.matmul %26, %28, %cst_30 {dimension_numbers = #tpu.dot_dimension_numbers<[1], [0], [0], [1], [0, 0, 1, 1], [], []>} : vector<10x84xf32>, vector<84x160xf32>, vector<10x160xf32> -> vector<10x160xf32>
    %30 = arith.addf %23, %29 : vector<10x160xf32>
    %c4 = arith.constant 4 : index
    %c0_31 = arith.constant 0 : index
    %c0_32 = arith.constant 0 : index
    %31 = vector.load %arg2[%c4, %c0_31, %c0_32] : memref<5x10x14xf32, #tpu.memory_space<vmem>>, vector<1x10x14xf32>
    %32 = vector.shape_cast %31 : vector<1x10x14xf32> to vector<10x14xf32>
    %cst_33 = arith.constant dense<0.000000e+00> : vector<10x84xf32>
    %33 = tpu.matmul %32, %1, %cst_33 {dimension_numbers = #tpu.dot_dimension_numbers<[1], [0], [0], [1], [0, 0, 1, 1], [], []>} : vector<10x14xf32>, vector<14x84xf32>, vector<10x84xf32> -> vector<10x84xf32>
    %c4_34 = arith.constant 4 : index
    %c0_35 = arith.constant 0 : index
    %c0_36 = arith.constant 0 : index
    %34 = vector.load %arg3[%c4_34, %c0_35, %c0_36] : memref<5x84x160xf32, #tpu.memory_space<vmem>>, vector<1x84x160xf32>
    %35 = vector.shape_cast %34 : vector<1x84x160xf32> to vector<84x160xf32>
    %cst_37 = arith.constant dense<0.000000e+00> : vector<10x160xf32>
    %36 = tpu.matmul %33, %35, %cst_37 {dimension_numbers = #tpu.dot_dimension_numbers<[1], [0], [0], [1], [0, 0, 1, 1], [], []>} : vector<10x84xf32>, vector<84x160xf32>, vector<10x160xf32> -> vector<10x160xf32>
    %37 = arith.addf %30, %36 : vector<10x160xf32>
    %c0_38 = arith.constant 0 : index
    %c0_39 = arith.constant 0 : index
    %38 = vector.load %arg4[%c0_38, %c0_39] : memref<1x160xf32, #tpu.memory_space<vmem>>, vector<1x160xf32>
    %39 = vector.broadcast %38 : vector<1x160xf32> to vector<10x160xf32>
    %40 = arith.addf %37, %39 : vector<10x160xf32>
    %41 = math.tanh %40 : vector<10x160xf32>
    %c0_40 = arith.constant 0 : index
    %c0_41 = arith.constant 0 : index
    %42 = vector.load %arg5[%c0_40, %c0_41] : memref<5x10xf32, #tpu.memory_space<vmem>>, vector<5x10xf32>
    %cst_42 = arith.constant dense<0.000000e+00> : vector<5x160xf32>
    %43 = tpu.matmul %42, %41, %cst_42 {dimension_numbers = #tpu.dot_dimension_numbers<[1], [0], [0], [1], [0, 0, 1, 1], [], []>} : vector<5x10xf32>, vector<10x160xf32>, vector<5x160xf32> -> vector<5x160xf32>
    %c0_43 = arith.constant 0 : index
    %c0_44 = arith.constant 0 : index
    %44 = vector.load %arg6[%c0_43, %c0_44] : memref<160x80xf32, #tpu.memory_space<vmem>>, vector<160x80xf32>
    %cst_45 = arith.constant dense<0.000000e+00> : vector<5x80xf32>
    %45 = tpu.matmul %43, %44, %cst_45 {dimension_numbers = #tpu.dot_dimension_numbers<[1], [0], [0], [1], [0, 0, 1, 1], [], []>} : vector<5x160xf32>, vector<160x80xf32>, vector<5x80xf32> -> vector<5x80xf32>
    %c0_46 = arith.constant 0 : index
    %c0_47 = arith.constant 0 : index
    %c0_48 = arith.constant 0 : index
    %46 = vector.load %arg7[%c0_46, %c0_47, %c0_48] : memref<1x5x80xf32, #tpu.memory_space<vmem>>, vector<1x5x80xf32>
    %47 = vector.shape_cast %46 : vector<1x5x80xf32> to vector<5x80xf32>
    %48 = vector.shape_cast %45 : vector<5x80xf32> to vector<1x5x80xf32>
    tpu.vector_store %arg7[%c0_46, %c0_47, %c0_48], %48 {strides = array<i32>} : memref<1x5x80xf32, #tpu.memory_space<vmem>>, vector<1x5x80xf32>,
    return
  }
  func.func @transform_0(%arg0: i32) -> (i32, i32, i32) {
    %c0_i32 = arith.constant 0 : i32
    %c0_i32_0 = arith.constant 0 : i32
    %c0_i32_1 = arith.constant 0 : i32
    return %arg0, %c0_i32, %c0_i32_0 : i32, i32, i32
  }
  func.func @transform_1(%arg0: i32) -> (i32, i32, i32) {
    %c0_i32 = arith.constant 0 : i32
    %c0_i32_0 = arith.constant 0 : i32
    %c0_i32_1 = arith.constant 0 : i32
    %c0_i32_2 = arith.constant 0 : i32
    return %c0_i32, %c0_i32_0, %c0_i32_1 : i32, i32, i32
  }
  func.func @transform_2(%arg0: i32) -> (i32, i32, i32) {
    %c0_i32 = arith.constant 0 : i32
    %c0_i32_0 = arith.constant 0 : i32
    %c0_i32_1 = arith.constant 0 : i32
    %c0_i32_2 = arith.constant 0 : i32
    return %c0_i32, %c0_i32_0, %c0_i32_1 : i32, i32, i32
  }
  func.func @transform_3(%arg0: i32) -> (i32, i32) {
    %c0_i32 = arith.constant 0 : i32
    %c0_i32_0 = arith.constant 0 : i32
    %c0_i32_1 = arith.constant 0 : i32
    return %c0_i32, %c0_i32_0 : i32, i32
  }
  func.func @transform_4(%arg0: i32) -> (i32, i32) {
    %c0_i32 = arith.constant 0 : i32
    %c0_i32_0 = arith.constant 0 : i32
    %c0_i32_1 = arith.constant 0 : i32
    return %c0_i32, %c0_i32_0 : i32, i32
  }
  func.func @transform_5(%arg0: i32) -> (i32, i32) {
    %c0_i32 = arith.constant 0 : i32
    %c0_i32_0 = arith.constant 0 : i32
    %c0_i32_1 = arith.constant 0 : i32
    return %c0_i32, %c0_i32_0 : i32, i32
  }
  func.func @transform_6(%arg0: i32) -> (i32, i32, i32) {
    %c0_i32 = arith.constant 0 : i32
    %c0_i32_0 = arith.constant 0 : i32
    %c0_i32_1 = arith.constant 0 : i32
    return %arg0, %c0_i32, %c0_i32_0 : i32, i32, i32
  }
}

module attributes {stable_mosaic.version = 11 : i64} {
  func.func @_conv_tanh_pool_kernel(%arg0: i32, %arg1: memref<1x32x32xf32, #tpu.memory_space<vmem>>, %arg2: memref<5x28x32xf32, #tpu.memory_space<vmem>>, %arg3: memref<5x32x168xf32, #tpu.memory_space<vmem>>, %arg4: memref<1x168xf32, #tpu.memory_space<vmem>>, %arg5: memref<14x28xf32, #tpu.memory_space<vmem>>, %arg6: memref<168x84xf32, #tpu.memory_space<vmem>>, %arg7: memref<1x14x84xf32, #tpu.memory_space<vmem>>) attributes {dimension_semantics = [#tpu.dimension_semantics<parallel>], iteration_bounds = array<i64: 2>, scalar_prefetch = 0 : i64, scratch_operands = 0 : i64, tpu.core_type = #tpu.core_type<tc>, window_params = [{transform_indices = @transform_0, window_bounds = array<i64: 1, 32, 32>}, {pipeline_mode = #tpu.pipeline_mode<synchronous>, transform_indices = @transform_1, window_bounds = array<i64: 5, 28, 32>}, {pipeline_mode = #tpu.pipeline_mode<synchronous>, transform_indices = @transform_2, window_bounds = array<i64: 5, 32, 168>}, {pipeline_mode = #tpu.pipeline_mode<synchronous>, transform_indices = @transform_3, window_bounds = array<i64: 1, 168>}, {pipeline_mode = #tpu.pipeline_mode<synchronous>, transform_indices = @transform_4, window_bounds = array<i64: 14, 28>}, {pipeline_mode = #tpu.pipeline_mode<synchronous>, transform_indices = @transform_5, window_bounds = array<i64: 168, 84>}, {transform_indices = @transform_6, window_bounds = array<i64: 1, 14, 84>}]} {
    %c0 = arith.constant 0 : index
    %c0_0 = arith.constant 0 : index
    %c0_1 = arith.constant 0 : index
    %0 = vector.load %arg1[%c0, %c0_0, %c0_1] : memref<1x32x32xf32, #tpu.memory_space<vmem>>, vector<1x32x32xf32>
    %1 = vector.shape_cast %0 : vector<1x32x32xf32> to vector<32x32xf32>
    %cst = arith.constant 0.000000e+00 : f32
    %2 = vector.broadcast %cst : f32 to vector<28x168xf32>
    %c0_2 = arith.constant 0 : index
    %c0_3 = arith.constant 0 : index
    %c0_4 = arith.constant 0 : index
    %3 = vector.load %arg2[%c0_2, %c0_3, %c0_4] : memref<5x28x32xf32, #tpu.memory_space<vmem>>, vector<1x28x32xf32>
    %4 = vector.shape_cast %3 : vector<1x28x32xf32> to vector<28x32xf32>
    %cst_5 = arith.constant dense<0.000000e+00> : vector<28x32xf32>
    %5 = tpu.matmul %4, %1, %cst_5 {dimension_numbers = #tpu.dot_dimension_numbers<[1], [0], [0], [1], [0, 0, 1, 1], [], []>} : vector<28x32xf32>, vector<32x32xf32>, vector<28x32xf32> -> vector<28x32xf32>
    %c0_6 = arith.constant 0 : index
    %c0_7 = arith.constant 0 : index
    %c0_8 = arith.constant 0 : index
    %6 = vector.load %arg3[%c0_6, %c0_7, %c0_8] : memref<5x32x168xf32, #tpu.memory_space<vmem>>, vector<1x32x168xf32>
    %7 = vector.shape_cast %6 : vector<1x32x168xf32> to vector<32x168xf32>
    %cst_9 = arith.constant dense<0.000000e+00> : vector<28x168xf32>
    %8 = tpu.matmul %5, %7, %cst_9 {dimension_numbers = #tpu.dot_dimension_numbers<[1], [0], [0], [1], [0, 0, 1, 1], [], []>} : vector<28x32xf32>, vector<32x168xf32>, vector<28x168xf32> -> vector<28x168xf32>
    %9 = arith.addf %2, %8 : vector<28x168xf32>
    %c1 = arith.constant 1 : index
    %c0_10 = arith.constant 0 : index
    %c0_11 = arith.constant 0 : index
    %10 = vector.load %arg2[%c1, %c0_10, %c0_11] : memref<5x28x32xf32, #tpu.memory_space<vmem>>, vector<1x28x32xf32>
    %11 = vector.shape_cast %10 : vector<1x28x32xf32> to vector<28x32xf32>
    %cst_12 = arith.constant dense<0.000000e+00> : vector<28x32xf32>
    %12 = tpu.matmul %11, %1, %cst_12 {dimension_numbers = #tpu.dot_dimension_numbers<[1], [0], [0], [1], [0, 0, 1, 1], [], []>} : vector<28x32xf32>, vector<32x32xf32>, vector<28x32xf32> -> vector<28x32xf32>
    %c1_13 = arith.constant 1 : index
    %c0_14 = arith.constant 0 : index
    %c0_15 = arith.constant 0 : index
    %13 = vector.load %arg3[%c1_13, %c0_14, %c0_15] : memref<5x32x168xf32, #tpu.memory_space<vmem>>, vector<1x32x168xf32>
    %14 = vector.shape_cast %13 : vector<1x32x168xf32> to vector<32x168xf32>
    %cst_16 = arith.constant dense<0.000000e+00> : vector<28x168xf32>
    %15 = tpu.matmul %12, %14, %cst_16 {dimension_numbers = #tpu.dot_dimension_numbers<[1], [0], [0], [1], [0, 0, 1, 1], [], []>} : vector<28x32xf32>, vector<32x168xf32>, vector<28x168xf32> -> vector<28x168xf32>
    %16 = arith.addf %9, %15 : vector<28x168xf32>
    %c2 = arith.constant 2 : index
    %c0_17 = arith.constant 0 : index
    %c0_18 = arith.constant 0 : index
    %17 = vector.load %arg2[%c2, %c0_17, %c0_18] : memref<5x28x32xf32, #tpu.memory_space<vmem>>, vector<1x28x32xf32>
    %18 = vector.shape_cast %17 : vector<1x28x32xf32> to vector<28x32xf32>
    %cst_19 = arith.constant dense<0.000000e+00> : vector<28x32xf32>
    %19 = tpu.matmul %18, %1, %cst_19 {dimension_numbers = #tpu.dot_dimension_numbers<[1], [0], [0], [1], [0, 0, 1, 1], [], []>} : vector<28x32xf32>, vector<32x32xf32>, vector<28x32xf32> -> vector<28x32xf32>
    %c2_20 = arith.constant 2 : index
    %c0_21 = arith.constant 0 : index
    %c0_22 = arith.constant 0 : index
    %20 = vector.load %arg3[%c2_20, %c0_21, %c0_22] : memref<5x32x168xf32, #tpu.memory_space<vmem>>, vector<1x32x168xf32>
    %21 = vector.shape_cast %20 : vector<1x32x168xf32> to vector<32x168xf32>
    %cst_23 = arith.constant dense<0.000000e+00> : vector<28x168xf32>
    %22 = tpu.matmul %19, %21, %cst_23 {dimension_numbers = #tpu.dot_dimension_numbers<[1], [0], [0], [1], [0, 0, 1, 1], [], []>} : vector<28x32xf32>, vector<32x168xf32>, vector<28x168xf32> -> vector<28x168xf32>
    %23 = arith.addf %16, %22 : vector<28x168xf32>
    %c3 = arith.constant 3 : index
    %c0_24 = arith.constant 0 : index
    %c0_25 = arith.constant 0 : index
    %24 = vector.load %arg2[%c3, %c0_24, %c0_25] : memref<5x28x32xf32, #tpu.memory_space<vmem>>, vector<1x28x32xf32>
    %25 = vector.shape_cast %24 : vector<1x28x32xf32> to vector<28x32xf32>
    %cst_26 = arith.constant dense<0.000000e+00> : vector<28x32xf32>
    %26 = tpu.matmul %25, %1, %cst_26 {dimension_numbers = #tpu.dot_dimension_numbers<[1], [0], [0], [1], [0, 0, 1, 1], [], []>} : vector<28x32xf32>, vector<32x32xf32>, vector<28x32xf32> -> vector<28x32xf32>
    %c3_27 = arith.constant 3 : index
    %c0_28 = arith.constant 0 : index
    %c0_29 = arith.constant 0 : index
    %27 = vector.load %arg3[%c3_27, %c0_28, %c0_29] : memref<5x32x168xf32, #tpu.memory_space<vmem>>, vector<1x32x168xf32>
    %28 = vector.shape_cast %27 : vector<1x32x168xf32> to vector<32x168xf32>
    %cst_30 = arith.constant dense<0.000000e+00> : vector<28x168xf32>
    %29 = tpu.matmul %26, %28, %cst_30 {dimension_numbers = #tpu.dot_dimension_numbers<[1], [0], [0], [1], [0, 0, 1, 1], [], []>} : vector<28x32xf32>, vector<32x168xf32>, vector<28x168xf32> -> vector<28x168xf32>
    %30 = arith.addf %23, %29 : vector<28x168xf32>
    %c4 = arith.constant 4 : index
    %c0_31 = arith.constant 0 : index
    %c0_32 = arith.constant 0 : index
    %31 = vector.load %arg2[%c4, %c0_31, %c0_32] : memref<5x28x32xf32, #tpu.memory_space<vmem>>, vector<1x28x32xf32>
    %32 = vector.shape_cast %31 : vector<1x28x32xf32> to vector<28x32xf32>
    %cst_33 = arith.constant dense<0.000000e+00> : vector<28x32xf32>
    %33 = tpu.matmul %32, %1, %cst_33 {dimension_numbers = #tpu.dot_dimension_numbers<[1], [0], [0], [1], [0, 0, 1, 1], [], []>} : vector<28x32xf32>, vector<32x32xf32>, vector<28x32xf32> -> vector<28x32xf32>
    %c4_34 = arith.constant 4 : index
    %c0_35 = arith.constant 0 : index
    %c0_36 = arith.constant 0 : index
    %34 = vector.load %arg3[%c4_34, %c0_35, %c0_36] : memref<5x32x168xf32, #tpu.memory_space<vmem>>, vector<1x32x168xf32>
    %35 = vector.shape_cast %34 : vector<1x32x168xf32> to vector<32x168xf32>
    %cst_37 = arith.constant dense<0.000000e+00> : vector<28x168xf32>
    %36 = tpu.matmul %33, %35, %cst_37 {dimension_numbers = #tpu.dot_dimension_numbers<[1], [0], [0], [1], [0, 0, 1, 1], [], []>} : vector<28x32xf32>, vector<32x168xf32>, vector<28x168xf32> -> vector<28x168xf32>
    %37 = arith.addf %30, %36 : vector<28x168xf32>
    %c0_38 = arith.constant 0 : index
    %c0_39 = arith.constant 0 : index
    %38 = vector.load %arg4[%c0_38, %c0_39] : memref<1x168xf32, #tpu.memory_space<vmem>>, vector<1x168xf32>
    %39 = vector.broadcast %38 : vector<1x168xf32> to vector<28x168xf32>
    %40 = arith.addf %37, %39 : vector<28x168xf32>
    %41 = math.tanh %40 : vector<28x168xf32>
    %c0_40 = arith.constant 0 : index
    %c0_41 = arith.constant 0 : index
    %42 = vector.load %arg5[%c0_40, %c0_41] : memref<14x28xf32, #tpu.memory_space<vmem>>, vector<14x28xf32>
    %cst_42 = arith.constant dense<0.000000e+00> : vector<14x168xf32>
    %43 = tpu.matmul %42, %41, %cst_42 {dimension_numbers = #tpu.dot_dimension_numbers<[1], [0], [0], [1], [0, 0, 1, 1], [], []>} : vector<14x28xf32>, vector<28x168xf32>, vector<14x168xf32> -> vector<14x168xf32>
    %c0_43 = arith.constant 0 : index
    %c0_44 = arith.constant 0 : index
    %44 = vector.load %arg6[%c0_43, %c0_44] : memref<168x84xf32, #tpu.memory_space<vmem>>, vector<168x84xf32>
    %cst_45 = arith.constant dense<0.000000e+00> : vector<14x84xf32>
    %45 = tpu.matmul %43, %44, %cst_45 {dimension_numbers = #tpu.dot_dimension_numbers<[1], [0], [0], [1], [0, 0, 1, 1], [], []>} : vector<14x168xf32>, vector<168x84xf32>, vector<14x84xf32> -> vector<14x84xf32>
    %c0_46 = arith.constant 0 : index
    %c0_47 = arith.constant 0 : index
    %c0_48 = arith.constant 0 : index
    %46 = vector.load %arg7[%c0_46, %c0_47, %c0_48] : memref<1x14x84xf32, #tpu.memory_space<vmem>>, vector<1x14x84xf32>
    %47 = vector.shape_cast %46 : vector<1x14x84xf32> to vector<14x84xf32>
    %48 = vector.shape_cast %45 : vector<14x84xf32> to vector<1x14x84xf32>
    tpu.vector_store %arg7[%c0_46, %c0_47, %c0_48], %48 {strides = array<i32>} : memref<1x14x84xf32, #tpu.memory_space<vmem>>, vector<1x14x84xf32>,
    return
  }
  func.func @transform_0(%arg0: i32) -> (i32, i32, i32) {
    %c0_i32 = arith.constant 0 : i32
    %c0_i32_0 = arith.constant 0 : i32
    %c0_i32_1 = arith.constant 0 : i32
    return %arg0, %c0_i32, %c0_i32_0 : i32, i32, i32
  }
  func.func @transform_1(%arg0: i32) -> (i32, i32, i32) {
    %c0_i32 = arith.constant 0 : i32
    %c0_i32_0 = arith.constant 0 : i32
    %c0_i32_1 = arith.constant 0 : i32
    %c0_i32_2 = arith.constant 0 : i32
    return %c0_i32, %c0_i32_0, %c0_i32_1 : i32, i32, i32
  }
  func.func @transform_2(%arg0: i32) -> (i32, i32, i32) {
    %c0_i32 = arith.constant 0 : i32
    %c0_i32_0 = arith.constant 0 : i32
    %c0_i32_1 = arith.constant 0 : i32
    %c0_i32_2 = arith.constant 0 : i32
    return %c0_i32, %c0_i32_0, %c0_i32_1 : i32, i32, i32
  }
  func.func @transform_3(%arg0: i32) -> (i32, i32) {
    %c0_i32 = arith.constant 0 : i32
    %c0_i32_0 = arith.constant 0 : i32
    %c0_i32_1 = arith.constant 0 : i32
    return %c0_i32, %c0_i32_0 : i32, i32
  }
  func.func @transform_4(%arg0: i32) -> (i32, i32) {
    %c0_i32 = arith.constant 0 : i32
    %c0_i32_0 = arith.constant 0 : i32
    %c0_i32_1 = arith.constant 0 : i32
    return %c0_i32, %c0_i32_0 : i32, i32
  }
  func.func @transform_5(%arg0: i32) -> (i32, i32) {
    %c0_i32 = arith.constant 0 : i32
    %c0_i32_0 = arith.constant 0 : i32
    %c0_i32_1 = arith.constant 0 : i32
    return %c0_i32, %c0_i32_0 : i32, i32
  }
  func.func @transform_6(%arg0: i32) -> (i32, i32, i32) {
    %c0_i32 = arith.constant 0 : i32
    %c0_i32_0 = arith.constant 0 : i32
    %c0_i32_1 = arith.constant 0 : i32
    return %arg0, %c0_i32, %c0_i32_0 : i32, i32, i32
  }
}

module attributes {stable_mosaic.version = 11 : i64} {
  func.func @_classifier_kernel(%arg0: i32, %arg1: memref<2x400xf32, #tpu.memory_space<vmem>>, %arg2: memref<400x120xf32, #tpu.memory_space<vmem>>, %arg3: memref<1x120xf32, #tpu.memory_space<vmem>>, %arg4: memref<120x84xf32, #tpu.memory_space<vmem>>, %arg5: memref<1x84xf32, #tpu.memory_space<vmem>>, %arg6: memref<84x10xf32, #tpu.memory_space<vmem>>, %arg7: memref<1x10xf32, #tpu.memory_space<vmem>>, %arg8: memref<2x10xf32, #tpu.memory_space<vmem>>) attributes {dimension_semantics = [#tpu.dimension_semantics<parallel>], iteration_bounds = array<i64: 1>, scalar_prefetch = 0 : i64, scratch_operands = 0 : i64, tpu.core_type = #tpu.core_type<tc>, window_params = [{transform_indices = @transform_0, window_bounds = array<i64: 2, 400>}, {pipeline_mode = #tpu.pipeline_mode<synchronous>, transform_indices = @transform_1, window_bounds = array<i64: 400, 120>}, {pipeline_mode = #tpu.pipeline_mode<synchronous>, transform_indices = @transform_2, window_bounds = array<i64: 1, 120>}, {pipeline_mode = #tpu.pipeline_mode<synchronous>, transform_indices = @transform_3, window_bounds = array<i64: 120, 84>}, {pipeline_mode = #tpu.pipeline_mode<synchronous>, transform_indices = @transform_4, window_bounds = array<i64: 1, 84>}, {pipeline_mode = #tpu.pipeline_mode<synchronous>, transform_indices = @transform_5, window_bounds = array<i64: 84, 10>}, {pipeline_mode = #tpu.pipeline_mode<synchronous>, transform_indices = @transform_6, window_bounds = array<i64: 1, 10>}, {transform_indices = @transform_7, window_bounds = array<i64: 2, 10>}]} {
    %c0 = arith.constant 0 : index
    %c0_0 = arith.constant 0 : index
    %0 = vector.load %arg1[%c0, %c0_0] : memref<2x400xf32, #tpu.memory_space<vmem>>, vector<2x400xf32>
    %c0_1 = arith.constant 0 : index
    %c0_2 = arith.constant 0 : index
    %1 = vector.load %arg2[%c0_1, %c0_2] : memref<400x120xf32, #tpu.memory_space<vmem>>, vector<400x120xf32>
    %cst = arith.constant dense<0.000000e+00> : vector<2x120xf32>
    %2 = tpu.matmul %0, %1, %cst {dimension_numbers = #tpu.dot_dimension_numbers<[1], [0], [0], [1], [0, 0, 1, 1], [], []>} : vector<2x400xf32>, vector<400x120xf32>, vector<2x120xf32> -> vector<2x120xf32>
    %c0_3 = arith.constant 0 : index
    %c0_4 = arith.constant 0 : index
    %3 = vector.load %arg3[%c0_3, %c0_4] : memref<1x120xf32, #tpu.memory_space<vmem>>, vector<1x120xf32>
    %4 = vector.broadcast %3 : vector<1x120xf32> to vector<2x120xf32>
    %5 = arith.addf %2, %4 : vector<2x120xf32>
    %6 = math.tanh %5 : vector<2x120xf32>
    %c0_5 = arith.constant 0 : index
    %c0_6 = arith.constant 0 : index
    %7 = vector.load %arg4[%c0_5, %c0_6] : memref<120x84xf32, #tpu.memory_space<vmem>>, vector<120x84xf32>
    %cst_7 = arith.constant dense<0.000000e+00> : vector<2x84xf32>
    %8 = tpu.matmul %6, %7, %cst_7 {dimension_numbers = #tpu.dot_dimension_numbers<[1], [0], [0], [1], [0, 0, 1, 1], [], []>} : vector<2x120xf32>, vector<120x84xf32>, vector<2x84xf32> -> vector<2x84xf32>
    %c0_8 = arith.constant 0 : index
    %c0_9 = arith.constant 0 : index
    %9 = vector.load %arg5[%c0_8, %c0_9] : memref<1x84xf32, #tpu.memory_space<vmem>>, vector<1x84xf32>
    %10 = vector.broadcast %9 : vector<1x84xf32> to vector<2x84xf32>
    %11 = arith.addf %8, %10 : vector<2x84xf32>
    %12 = math.tanh %11 : vector<2x84xf32>
    %c0_10 = arith.constant 0 : index
    %c0_11 = arith.constant 0 : index
    %13 = vector.load %arg6[%c0_10, %c0_11] : memref<84x10xf32, #tpu.memory_space<vmem>>, vector<84x10xf32>
    %cst_12 = arith.constant dense<0.000000e+00> : vector<2x10xf32>
    %14 = tpu.matmul %12, %13, %cst_12 {dimension_numbers = #tpu.dot_dimension_numbers<[1], [0], [0], [1], [0, 0, 1, 1], [], []>} : vector<2x84xf32>, vector<84x10xf32>, vector<2x10xf32> -> vector<2x10xf32>
    %c0_13 = arith.constant 0 : index
    %c0_14 = arith.constant 0 : index
    %15 = vector.load %arg7[%c0_13, %c0_14] : memref<1x10xf32, #tpu.memory_space<vmem>>, vector<1x10xf32>
    %16 = vector.broadcast %15 : vector<1x10xf32> to vector<2x10xf32>
    %17 = arith.addf %14, %16 : vector<2x10xf32>
    %cst_15 = arith.constant dense<0xFF800000> : vector<2xf32>
    %18 = vector.multi_reduction <maximumf>, %17, %cst_15 [1] : vector<2x10xf32> to vector<2xf32>
    %19 = vector.shape_cast %18 : vector<2xf32> to vector<2x1xf32>
    %20 = vector.broadcast %19 : vector<2x1xf32> to vector<2x10xf32>
    %21 = arith.subf %17, %20 : vector<2x10xf32>
    %22 = math.exp %21 : vector<2x10xf32>
    %cst_16 = arith.constant dense<0.000000e+00> : vector<2xf32>
    %23 = vector.multi_reduction <add>, %22, %cst_16 [1] : vector<2x10xf32> to vector<2xf32>
    %24 = vector.shape_cast %23 : vector<2xf32> to vector<2x1xf32>
    %25 = math.log %24 : vector<2x1xf32>
    %26 = vector.broadcast %25 : vector<2x1xf32> to vector<2x10xf32>
    %27 = arith.subf %21, %26 : vector<2x10xf32>
    %c0_17 = arith.constant 0 : index
    %c0_18 = arith.constant 0 : index
    %28 = vector.load %arg8[%c0_17, %c0_18] : memref<2x10xf32, #tpu.memory_space<vmem>>, vector<2x10xf32>
    tpu.vector_store %arg8[%c0_17, %c0_18], %27 {strides = array<i32>} : memref<2x10xf32, #tpu.memory_space<vmem>>, vector<2x10xf32>,
    return
  }
  func.func @transform_0(%arg0: i32) -> (i32, i32) {
    %c0_i32 = arith.constant 0 : i32
    %c0_i32_0 = arith.constant 0 : i32
    return %arg0, %c0_i32 : i32, i32
  }
  func.func @transform_1(%arg0: i32) -> (i32, i32) {
    %c0_i32 = arith.constant 0 : i32
    %c0_i32_0 = arith.constant 0 : i32
    %c0_i32_1 = arith.constant 0 : i32
    return %c0_i32, %c0_i32_0 : i32, i32
  }
  func.func @transform_2(%arg0: i32) -> (i32, i32) {
    %c0_i32 = arith.constant 0 : i32
    %c0_i32_0 = arith.constant 0 : i32
    %c0_i32_1 = arith.constant 0 : i32
    return %c0_i32, %c0_i32_0 : i32, i32
  }
  func.func @transform_3(%arg0: i32) -> (i32, i32) {
    %c0_i32 = arith.constant 0 : i32
    %c0_i32_0 = arith.constant 0 : i32
    %c0_i32_1 = arith.constant 0 : i32
    return %c0_i32, %c0_i32_0 : i32, i32
  }
  func.func @transform_4(%arg0: i32) -> (i32, i32) {
    %c0_i32 = arith.constant 0 : i32
    %c0_i32_0 = arith.constant 0 : i32
    %c0_i32_1 = arith.constant 0 : i32
    return %c0_i32, %c0_i32_0 : i32, i32
  }
  func.func @transform_5(%arg0: i32) -> (i32, i32) {
    %c0_i32 = arith.constant 0 : i32
    %c0_i32_0 = arith.constant 0 : i32
    %c0_i32_1 = arith.constant 0 : i32
    return %c0_i32, %c0_i32_0 : i32, i32
  }
  func.func @transform_6(%arg0: i32) -> (i32, i32) {
    %c0_i32 = arith.constant 0 : i32
    %c0_i32_0 = arith.constant 0 : i32
    %c0_i32_1 = arith.constant 0 : i32
    return %c0_i32, %c0_i32_0 : i32, i32
  }
  func.func @transform_7(%arg0: i32) -> (i32, i32) {
    %c0_i32 = arith.constant 0 : i32
    %c0_i32_0 = arith.constant 0 : i32
    return %arg0, %c0_i32 : i32, i32
  }
}

</mosaic_0001>

<bundles_post_ra>
// kernel: lenet_forward.5
= control target key start
LH: loop header
LB: loop body
LE: loop exit
PB: predicated region body
PF: predicated region fallthrough
CT: control target
= control target key end

     0   :  { %v732_v4 = vmov 0.0|0.0   ;;  %v733_v26 = vmov 1983009808   ;;  %v90_v28 = vlaneseq  ;;  %s1053_s0 = inlined_call_operand.vmem [shape: f32[2,400], index: 0, kind: input, shape index: {}]   ;;  %s1054_s1 = inlined_call_operand.vmem [shape: f32[400,120], index: 1, kind: input, shape index: {}]   ;;  %s1055_s2 = inlined_call_operand.vmem [shape: f32[1,120], index: 2, kind: input, shape index: {}]   ;;  %s1056_s3 = inlined_call_operand.vmem [shape: f32[120,84], index: 3, kind: input, shape index: {}]   ;;  %s1057_s4 = inlined_call_operand.vmem [shape: f32[1,84], index: 4, kind: input, shape index: {}]   ;;  %s1058_s5 = inlined_call_operand.vmem [shape: f32[84,10], index: 5, kind: input, shape index: {}]   ;;  %s1059_s6 = inlined_call_operand.vmem [shape: f32[1,10], index: 6, kind: input, shape index: {}]   ;;  %s1060_s7 = inlined_call_operand.hbm [shape: f32[2,10], index: 7, kind: output, shape index: {}]  }
   0x1   :  { %v44_v0 = vld [vmem:[%s1054_s1 + $0x80] sm:$0xff]  ;;  %v45_v1 = vld [vmem:[%s1054_s1 + $0x88] sm:$0xff]  ;;  %631 = vmatprep.subr.bf16.mxu1 %v732_v4  ;;  %v46_v10 = vld [vmem:[%s1054_s1 + $0x90] sm:$0xff]  ;;  %v88_v27 = vunpack.c.l.s4 %v733_v26 }
   0x2   :  { %v28_v2 = vld [vmem:[%s1054_s1] sm:$0xff]  ;;  %v599_v3 = vpack.c.bf16 %v45_v1, %v44_v0  ;;  %v29_v5 = vld [vmem:[%s1054_s1 + $0x8] sm:$0xff]  ;;  %v47_v11 = vld [vmem:[%s1054_s1 + $0x98] sm:$0xff]  ;;  %v91_v39 = vshrl.u32 %v90_v28, 7 }
   0x3   :  { %v60_v6 = vld [vmem:[%s1054_s1 + $0x100] sm:$0xff]  ;;  %v61_v7 = vld [vmem:[%s1054_s1 + $0x108] sm:$0xff]  ;;  %v601_v8 = vpack.c.bf16 %v29_v5, %v28_v2  ;;  %v30_v12 = vld [vmem:[%s1054_s1 + $0x10] sm:$0xff]  ;;  %v603_v13 = vpack.c.bf16 %v47_v11, %v46_v10  ;;  %v89_v38 = vunpack.c.0.s8 %v88_v27 }
   0x4   :  { %v632_v9 = vpack.c.bf16 %v61_v7, %v60_v6  ;;  %600 = vmatprep.subr.bf16.mxu0 %v599_v3  ;;  %v31_v14 = vld [vmem:[%s1054_s1 + $0x18] sm:$0xff]  ;;  %v62_v15 = vld [vmem:[%s1054_s1 + $0x110] sm:$0xff]  ;;  %v48_v19 = vld [vmem:[%s1054_s1 + $0xa0] sm:$0xff] }
   0x5   :  { %v63_v16 = vld [vmem:[%s1054_s1 + $0x118] sm:$0xff]  ;;  %602 = vmatpush3.bf16.msra.mxu0 %v601_v8  ;;  %v605_v17 = vpack.c.bf16 %v31_v14, %v30_v12  ;;  %v49_v20 = vld [vmem:[%s1054_s1 + $0xa8] sm:$0xff]  ;;  %v32_v21 = vld [vmem:[%s1054_s1 + $0x20] sm:$0xff]  ;;  %v92_v49 = vsub.s32 %v89_v38, %v91_v39 }
   0x6   :  { %633 = vmatpush1.bf16.msra.mxu1 %v632_v9  ;;  %v635_v18 = vpack.c.bf16 %v63_v16, %v62_v15  ;;  %604 = vmatprep.subr.bf16.mxu0 %v603_v13  ;;  %v607_v22 = vpack.c.bf16 %v49_v20, %v48_v19  ;;  %v33_v23 = vld [vmem:[%s1054_s1 + $0x28] sm:$0xff]  ;;  %v64_v24 = vld [vmem:[%s1054_s1 + $0x120] sm:$0xff]  ;;  %v50_v29 = vld [vmem:[%s1054_s1 + $0xb0] sm:$0xff] }
   0x7   :  { %634 = vmatprep.subr.bf16.mxu1 %v732_v4  ;;  %v65_v25 = vld [vmem:[%s1054_s1 + $0x128] sm:$0xff]  ;;  %v51_v30 = vld [vmem:[%s1054_s1 + $0xb8] sm:$0xff]  ;;  %v609_v31 = vpack.c.bf16 %v33_v23, %v32_v21  ;;  %v34_v33 = vld [vmem:[%s1054_s1 + $0x30] sm:$0xff] }
   0x8   :  { %v638_v32 = vpack.c.bf16 %v65_v25, %v64_v24  ;;  %v611_v34 = vpack.c.bf16 %v51_v30, %v50_v29  ;;  %v35_v35 = vld [vmem:[%s1054_s1 + $0x38] sm:$0xff]  ;;  %v66_v36 = vld [vmem:[%s1054_s1 + $0x130] sm:$0xff]  ;;  %v52_v40 = vld [vmem:[%s1054_s1 + $0xc0] sm:$0xff] }
   0x9   :  { %606 = vmatpush3.bf16.msra.mxu0 %v605_v17  ;;  %v67_v37 = vld [vmem:[%s1054_s1 + $0x138] sm:$0xff]  ;;  %v53_v41 = vld [vmem:[%s1054_s1 + $0xc8] sm:$0xff]  ;;  %v613_v42 = vpack.c.bf16 %v35_v35, %v34_v33  ;;  %v36_v44 = vld [vmem:[%s1054_s1 + $0x40] sm:$0xff] }
   0xa   :  { %636 = vmatpush1.bf16.msra.mxu1 %v635_v18  ;;  %608 = vmatprep.subr.bf16.mxu0 %v607_v22  ;;  %v641_v43 = vpack.c.bf16 %v67_v37, %v66_v36  ;;  %v615_v45 = vpack.c.bf16 %v53_v41, %v52_v40  ;;  %v37_v46 = vld [vmem:[%s1054_s1 + $0x48] sm:$0xff]  ;;  %v68_v47 = vld [vmem:[%s1054_s1 + $0x140] sm:$0xff]  ;;  %v54_v50 = vld [vmem:[%s1054_s1 + $0xd0] sm:$0xff] }
   0xb   :  { %637 = vmatprep.subr.bf16.mxu1 %v732_v4  ;;  %v69_v48 = vld [vmem:[%s1054_s1 + $0x148] sm:$0xff]  ;;  %v55_v51 = vld [vmem:[%s1054_s1 + $0xd8] sm:$0xff]  ;;  %v617_v52 = vpack.c.bf16 %v37_v46, %v36_v44  ;;  %v38_v54 = vld [vmem:[%s1054_s1 + $0x50] sm:$0xff] }
   0xc   :  { %v644_v53 = vpack.c.bf16 %v69_v48, %v68_v47  ;;  %v27_v55 = vld [vmem:[%s1053_s0] sm:$0xff]  ;;  %v619_v56 = vpack.c.bf16 %v55_v51, %v54_v50  ;;  %v39_v57 = vld [vmem:[%s1054_s1 + $0x58] sm:$0xff]  ;;  %v70_v58 = vld [vmem:[%s1054_s1 + $0x150] sm:$0xff] }
   0xd   :  { %610 = vmatpush3.bf16.msra.mxu0 %v609_v31  ;;  %v71_v59 = vld [vmem:[%s1054_s1 + $0x158] sm:$0xff]  ;;  %v86_v60 = vcombine.high %v27_v55, %v27_v55  ;;  %v93_v61 = vrot.slane %v27_v55, %v92_v49  ;;  %v56_v62 = vld [vmem:[%s1054_s1 + $0xe0] sm:$0xff]  ;;  %v57_v63 = vld [vmem:[%s1054_s1 + $0xe8] sm:$0xff] }
   0xe   :  { %639 = vmatpush1.bf16.msra.mxu1 %v638_v32  ;;  %612 = vmatprep.subr.bf16.mxu0 %v611_v34 }
   0xf   :  { %640 = vmatprep.subr.bf16.mxu1 %v732_v4  ;;  %v101_v0 = vcombine.high %v93_v61, %v93_v61  ;;  %v100_v1 = vrot.slane %v86_v60, %v92_v49 }
  0x11   :  { %614 = vmatpush3.bf16.msra.mxu0 %v613_v42 }
  0x12   :  { %642 = vmatpush1.bf16.msra.mxu1 %v641_v43  ;;  %616 = vmatprep.subr.bf16.mxu0 %v615_v45 }
  0x13   :  { %643 = vmatprep.subr.bf16.mxu1 %v732_v4 }
  0x14   :  { %12 = vsyncpa [#allocation3], 0  ;;  %v621_v2 = vpack.c.bf16 %v39_v57, %v38_v54  ;;  %v647_v3 = vpack.c.bf16 %v71_v59, %v70_v58  ;;  %v40_v5 = vld [vmem:[%s1054_s1 + $0x60] sm:$0xff]  ;;  %vm106_vm0 = vcmask 130048   ;;  %v623_v6 = vpack.c.bf16 %v57_v63, %v56_v62  ;;  %v41_v7 = vld [vmem:[%s1054_s1 + $0x68] sm:$0xff]  ;;  %173 = vmatprep.mubr.f32.mxu0 %v101_v0 }
  0x15   :  { %618 = vmatpush3.bf16.msra.mxu0 %v617_v52  ;;  %v72_v8 = vld [vmem:[%s1054_s1 + $0x160] sm:$0xff]  ;;  %v73_v9 = vld [vmem:[%s1054_s1 + $0x168] sm:$0xff]  ;;  %v102_v10 = vcombine.high %v100_v1, %v100_v1  ;;  %v58_v11 = vld [vmem:[%s1054_s1 + $0xf0] sm:$0xff]  ;;  %v625_v13 = vpack.c.bf16 %v41_v7, %v40_v5  ;;  %vm734_vm1 = vmmov 0   ;;  %v735_v45 = vmov 0.0  }
  0x16   :  { %645 = vmatpush1.bf16.msra.mxu1 %v644_v53  ;;  %620 = vmatprep.subr.bf16.mxu0 %v619_v56  ;;  %v59_v12 = vld [vmem:[%s1054_s1 + $0xf8] sm:$0xff]  ;;  %v650_v14 = vpack.c.bf16 %v73_v9, %v72_v8  ;;  %v42_v15 = vld [vmem:[%s1054_s1 + $0x70] sm:$0xff]  ;;  %v76_v22 = vld [vmem:[%s1054_s1 + $0x180] sm:$0xff]  ;;  %vm272_vm2 = vcmask 982016   ;;  %vm369_vm3 = vcmask 1043456   ;;  %vm365_vm4 = vcmask 687104  }
  0x17   :  { %646 = vmatprep.subr.bf16.mxu1 %v732_v4  ;;  %472 = vmatprep.mubr.msk.f32.mxu1 %vm106_vm0, %v102_v10  ;;  %v627_v16 = vpack.c.bf16 %v59_v12, %v58_v11  ;;  %v43_v17 = vld [vmem:[%s1054_s1 + $0x78] sm:$0xff]  ;;  %v74_v18 = vld [vmem:[%s1054_s1 + $0x170] sm:$0xff]  ;;  %v77_v23 = vld [vmem:[%s1054_s1 + $0x188] sm:$0xff]  ;;  %vm443_vm5 = vcmask 74752  }
  0x18   :  { %v75_v19 = vld [vmem:[%s1054_s1 + $0x178] sm:$0xff]  ;;  %v629_v20 = vpack.c.bf16 %v43_v17, %v42_v15  ;;  %v250_v24 = vld [vmem:[%s1056_s3] sm:$0xff]  ;;  %v251_v25 = vld [vmem:[%s1056_s3 + $0x8] sm:$0xff]  ;;  %v656_v26 = vpack.c.bf16 %v77_v23, %v76_v22 }
  0x19   :  { %622 = vmatpush3.bf16.msra.mxu0 %v621_v2  ;;  %v653_v21 = vpack.c.bf16 %v75_v19, %v74_v18  ;;  %v659_v27 = vpack.c.bf16 %v251_v25, %v250_v24  ;;  %v252_v28 = vld [vmem:[%s1056_s3 + $0x10] sm:$0xff]  ;;  %v253_v29 = vld [vmem:[%s1056_s3 + $0x18] sm:$0xff]  ;;  %v254_v31 = vld [vmem:[%s1056_s3 + $0x20] sm:$0xff] }
  0x1a   :  { %648 = vmatpush1.bf16.msra.mxu1 %v647_v3  ;;  %624 = vmatprep.subr.bf16.mxu0 %v623_v6  ;;  %v662_v30 = vpack.c.bf16 %v253_v29, %v252_v28  ;;  %v255_v32 = vld [vmem:[%s1056_s3 + $0x28] sm:$0xff]  ;;  %v256_v34 = vld [vmem:[%s1056_s3 + $0x30] sm:$0xff]  ;;  %v257_v35 = vld [vmem:[%s1056_s3 + $0x38] sm:$0xff] }
  0x1b   :  { %649 = vmatprep.subr.bf16.mxu1 %v732_v4  ;;  %v665_v33 = vpack.c.bf16 %v255_v32, %v254_v31  ;;  %v668_v36 = vpack.c.bf16 %v257_v35, %v256_v34  ;;  %v258_v37 = vld [vmem:[%s1056_s3 + $0x40] sm:$0xff]  ;;  %v259_v38 = vld [vmem:[%s1056_s3 + $0x48] sm:$0xff]  ;;  %v260_v40 = vld [vmem:[%s1056_s3 + $0x50] sm:$0xff] }
  0x1c   :  { %v671_v39 = vpack.c.bf16 %v259_v38, %v258_v37  ;;  %v261_v41 = vld [vmem:[%s1056_s3 + $0x58] sm:$0xff]  ;;  %v262_v43 = vld [vmem:[%s1056_s3 + $0x60] sm:$0xff]  ;;  %v263_v44 = vld [vmem:[%s1056_s3 + $0x68] sm:$0xff] }
  0x1d   :  { %626 = vmatpush3.bf16.msra.mxu0 %v625_v13  ;;  %v674_v42 = vpack.c.bf16 %v261_v41, %v260_v40  ;;  %v677_v46 = vpack.c.bf16 %v263_v44, %v262_v43  ;;  %v264_v47 = vld [vmem:[%s1056_s3 + $0x70] sm:$0xff]  ;;  %v347_v48 = vld [vmem:[%s1058_s5] sm:$0xff]  ;;  %v348_v49 = vld [vmem:[%s1058_s5 + $0x8] sm:$0xff] }
  0x1e   :  { %651 = vmatpush1.bf16.msra.mxu1 %v650_v14  ;;  %628 = vmatprep.subr.bf16.mxu0 %v627_v16  ;;  %v349_v50 = vld [vmem:[%s1058_s5 + $0x10] sm:$0xff]  ;;  %v680_v51 = vpack.c.bf16 %v348_v49, %v347_v48  ;;  %v350_v52 = vld [vmem:[%s1058_s5 + $0x18] sm:$0xff]  ;;  %v471_v56 = vld [vmem:[%s1055_s2] ss:$0 sm:$0xff] }
  0x1f   :  { %652 = vmatprep.subr.bf16.mxu1 %v732_v4  ;;  %v683_v53 = vpack.c.bf16 %v350_v52, %v349_v50  ;;  %v351_v63 = vld [vmem:[%s1058_s5 + $0x20] sm:$0xff]  ;;  %v352_v0 = vld [vmem:[%s1058_s5 + $0x28] sm:$0xff]  ;;  %v353_v2 = vld [vmem:[%s1058_s5 + $0x30] sm:$0xff] }
  0x20   :  { %v354_v3 = vld [vmem:[%s1058_s5 + $0x38] sm:$0xff]  ;;  %v355_v6 = vld [vmem:[%s1058_s5 + $0x40] sm:$0xff]  ;;  %v356_v7 = vld [vmem:[%s1058_s5 + $0x48] sm:$0xff] }
  0x21   :  { %630 = vmatpush3.bf16.msra.mxu0 %v629_v20  ;;  %v689_v5 = vpack.c.bf16 %v354_v3, %v353_v2  ;;  %v692_v8 = vpack.c.bf16 %v356_v7, %v355_v6  ;;  %v357_v9 = vld [vmem:[%s1058_s5 + $0x50] sm:$0xf]  ;;  %v473_v10 = vld [vmem:[%s1057_s4] ss:$0 sm:$0xff]  ;;  %s736_s4 = smov [#allocation2]  }
  0x22   :  { %654 = vmatpush1.bf16.msra.mxu1 %v653_v21  ;;  %658 = vmatprep.subr.bf16.mxu0 %v732_v4  ;;  %s463_s5 = sshll.u32 %s736_s4, 4  ;;  %s464_s5 = int_to_ptr.vmem [resolvable:$true] %s463_s5 }
  0x23   :  { %655 = vmatprep.subr.bf16.mxu1 %v732_v4  ;;  %p713_p1 = scmp.lt.s32.totalorder %s464_s5, %s464_s5 }
  0x24   :  { %174 = vmatmul.mubr.f32.vlgmr.msra.gmra.mrb[0].mxu0 %v93_v61 }
  0x25   :  { %660 = vmatpush3.bf16.msra.mxu0 %v659_v27  ;;  %571 = vmatprep.mubr.msk.f32.mxu0 %vm734_vm1, %v735_v45 }
  0x26   :  { %657 = vmatpush1.bf16.msra.mxu1 %v656_v26  ;;  %661 = vmatprep.subr.bf16.mxu0 %v732_v4 }
  0x27   :  { %679 = vmatprep.subr.bf16.mxu1 %v732_v4 }
  0x29   :  { %244 = vmatmul.mubr.f32.vlgmr.msra.gmra.mrb[0].mxu1 %v100_v1  ;;  %663 = vmatpush3.bf16.msra.mxu0 %v662_v30  ;;  %v686_v1 = vpack.c.bf16 %v352_v0, %v351_v63 }
  0x2a   :  { %664 = vmatprep.subr.bf16.mxu0 %v732_v4  ;;  %596 = vmatprep.mubr.msk.f32.mxu1 %vm734_vm1, %v735_v45 }
  0x2b   :  { %681 = vmatpush3.bf16.msra.mxu1 %v680_v51 }
  0x2c   :  { %682 = vmatprep.subr.bf16.mxu1 %v732_v4 }
  0x2d   :  { %666 = vmatpush3.bf16.msra.mxu0 %v665_v33 }
  0x2e   :  { %667 = vmatprep.subr.bf16.mxu0 %v732_v4 }
  0x2f   :  { %684 = vmatpush3.bf16.msra.mxu1 %v683_v53 }
  0x30   :  { %685 = vmatprep.subr.bf16.mxu1 %v732_v4 }
  0x31   :  { %669 = vmatpush3.bf16.msra.mxu0 %v668_v36 }
  0x32   :  { %670 = vmatprep.subr.bf16.mxu0 %v732_v4 }
  0x33   :  { %687 = vmatpush3.bf16.msra.mxu1 %v686_v1 }
  0x34   :  { %688 = vmatprep.subr.bf16.mxu1 %v732_v4 }
  0x35   :  { %672 = vmatpush3.bf16.msra.mxu0 %v671_v39 }
  0x36   :  { %673 = vmatprep.subr.bf16.mxu0 %v732_v4 }
  0x37   :  { %690 = vmatpush3.bf16.msra.mxu1 %v689_v5 }
  0x38   :  { %691 = vmatprep.subr.bf16.mxu1 %v732_v4 }
  0x39   :  { %675 = vmatpush3.bf16.msra.mxu0 %v674_v42 }
  0x3a   :  { %676 = vmatprep.subr.bf16.mxu0 %v732_v4  ;;  %v475_v4 = vld [vmem:[%s1059_s6] ss:$0 sm:$0xff]  ;;  %s708_s6 = scalar_lea.vmem %s464_s5, 32 }
  0x3b   :  { %693 = vmatpush3.bf16.msra.mxu1 %v692_v8  ;;  %p709_p0 = scmp.ne.s32.totalorder %s464_s5, %s708_s6  ;;  %p714_p2 = scmp.lt.s32.totalorder %s708_s6, %s708_s6 }
  0x3c   :  { %594 = vmatprep.subr.mxu1 %v735_v45 }
  0x3d   :  { %678 = vmatpush3.bf16.msra.mxu0 %v677_v46  ;;  %p715_p3 = por %p714_p2, %p713_p1 }
  0x3e   :  { %569 = vmatprep.subr.mxu0 %v735_v45 }
  0x3f   :  { %595 = vmatpush3.msk.msra.mxu1 %vm369_vm3, %v357_v9  ;;  %p716_p4 = pnand %p715_p3, %p709_p0 }
  0x41   :  { %570 = vmatpush3.msra.mxu0 %v264_v47 }
  0xf7   :  { %v510_v54 = vpop.f32.mrb[0].mxu0 }
  0xf8   :  { %v511_v55 = vpop.f32.mrb[1].mxu0 }
  0xf9   :  { %v512_v57 = vadd.f32 %v511_v55, %v510_v54 }
  0xfb   :  { %v176_v58 = vadd.f32 %v512_v57, %v471_v56 }
  0xfc   :  { %v245_v59 = vpop.f32.mrb[0].mxu1 }
  0xfd   :  { %v247_v60 = vpop.f32.mrb[1].mxu1  ;;  %v246_v61 = vadd.f32 %v245_v59, %v176_v58 }
  0xff   :  { %700 = vtanh.f32 %v246_v61 }
 0x109   :  { %v701_v62 = vpop.eup %700 }
 0x10a   :  { %572 = vmatmul.mubr.msk.f32.vlgmr.msra.gmra.mrb[2].mxu0 %vm272_vm2, %v701_v62 }
 0x1dd   :  { %v342_v11 = vpop.f32.mrb[2].mxu0 }
 0x1de   :  { %v343_v12 = vadd.f32 %v473_v10, %v342_v11  ;;  %v573_v13 = vpop.f32.mrb[3].mxu0 }
 0x1e0   :  { %702 = vtanh.f32 %v343_v12 }
 0x1ea   :  { %v703_v14 = vpop.eup %702 }
 0x1eb   :  { %597 = vmatmul.mubr.msk.f32.vlgmr.msra.gmra.mrb[2].mxu1 %vm365_vm4, %v703_v14 }
 0x2be   :  { %v439_v15 = vpop.f32.mrb[2].mxu1 }
 0x2bf   :  { %v440_v16 = vadd.f32 %v475_v4, %v439_v15  ;;  %v598_v17 = vpop.f32.mrb[3].mxu1 }
 0x2c1   :  { %v444_v18 = vsel %vm443_vm5, %v440_v16, -inf }
 0x2c2   :  { %445 = vmax.xlane.f32.xlu0 %v444_v18 }
 0x34f   :  { %v446_v19 = vpop.xlane.xlu0 %445 }
 0x350   :  { %v447_v20 = vsub.f32 %v440_v16, %v446_v19 }
 0x352   :  { %v448_v21 = vmul.f32 1.442695, %v447_v20 }
 0x354   :  { %704 = vpow2.f32 %v448_v21 }
 0x35e   :  { %v705_v22 = vpop.eup %704 }
 0x35f   :  { %v450_v23 = vsel %vm443_vm5, %v705_v22, 0.0 }
 0x360   :  { %451 = vadd.xlane.f32.xlu0 %v450_v23 }
 0x3ed   :  { %v452_v24 = vpop.xlane.xlu0 %451 }
 0x3ee   :  { %706 = vlog2.f32 %v452_v24 }
 0x3f8   :  { %v707_v25 = vpop.eup %706 }
 0x3f9   :  { %v454_v26 = vmul.f32 0.6931472, %v707_v25 }
 0x3fb   :  { %v455_v27 = vsub.f32 %v447_v20, %v454_v26 }
 0x3fd   :  { %456 = vst.msk [vmem:[#allocation2] sm:$0x3] %vm443_vm5, %v455_v27 }
 0x3fe   :  { %719 = shalt.err (!%p716_p4)
}
 0x3ff   :  { %s720_s16 = scalar_lea.hbm %s1060_s7, 32 }
 0x400   :  { %p721_p5 = scmp.ne.s32.totalorder %s1060_s7, %s720_s16  ;;  %p724_p6 = scmp.lt.u32.totalorder %s720_s16, %s1060_s7 }
 0x402   :  { %p726_p7 = pnand %p724_p6, %p721_p5 }
 0x404   :  { %729 = shalt.err (!%p726_p7)
}
 0x405   :  { %466 = dma.vmem_to_hbm [thread:$0]  %s464_s5, 32, %s1060_s7, [#allocation3]  }
 0x406   :  { %730 = dma.done.wait [#allocation3], 32  }
 0x407   :  { %731 = vsyncadd [#allocation3], 4294967264 }
 0x408   :  { %470 = vsyncpa [#allocation3], 1 }

// kernel: lenet_forward.3
= control target key start
LH: loop header
LB: loop body
LE: loop exit
PB: predicated region body
PF: predicated region fallthrough
CT: control target
= control target key end

     0   :  { %s2064_s21 = smov 0   ;;  %s2412_s0 = inlined_call_operand.vmem [shape: f32[2,32,32], index: 0, kind: input, shape index: {}]   ;;  %s2413_s1 = inlined_call_operand.vmem [shape: f32[5,28,32], index: 1, kind: input, shape index: {}]   ;;  %s2414_s2 = inlined_call_operand.vmem [shape: f32[5,32,168], index: 2, kind: input, shape index: {}]   ;;  %s2415_s3 = inlined_call_operand.vmem [shape: f32[1,168], index: 3, kind: input, shape index: {}]   ;;  %s2416_s4 = inlined_call_operand.vmem [shape: f32[14,28], index: 4, kind: input, shape index: {}]   ;;  %s2417_s5 = inlined_call_operand.vmem [shape: f32[168,84], index: 5, kind: input, shape index: {}]   ;;  %s2418_s6 = inlined_call_operand.vmem [shape: f32[2,14,84], index: 6, kind: output, shape index: {}]  }
   0x1 LB: > { %s1622_s22 = sadd.s32 4294967295, %s2024_s21   ;;  %p1626_p0 = scmp.ge.s32.totalorder %s2024_s21, 1  ;;  %s2024_s21 = sphi %s2064_s21, %s16_s21  }
   0x2   : > { %p212_p1 = scmp.lt.s32.totalorder %s2024_s21, 3 }
   0x4   : > { %p213_p2 = pnand %p1626_p0, %p212_p1 }
   0x5   : > { %p242_p3 = scmp.lt.s32.totalorder (!%p213_p2), %s1622_s22, 1  ;;  %vm260_vm0 = vcmask (!%p213_p2), 261120   ;;  %v1635_v0 = vld [vmem:[%s2413_s1 + $0x20] sm:$0xff] (!%p213_p2)  ;;  %v1644_v8 = vld [vmem:[%s2414_s2 + $0x48] sm:$0xff] (!%p213_p2)  ;;  %v1646_v9 = vld [vmem:[%s2414_s2 + $0x58] sm:$0xff] (!%p213_p2)  ;;  %v2026_v38 = vmov (!%p213_p2), 0.0  }
   0x6   : > { %216 = sbr.rel (%p213_p2) target bundleno = 979 (0x3d3), region = 44  ;;  %1791 = vmatprep.mubr.msk.f32.mxu1 (!%p213_p2), %vm260_vm0, %v1635_v0  ;;  %v256_v1 = vld [vmem:[%s2413_s1] sm:$0xff] (!%p213_p2)  ;;  %v1855_v10 = vpack.c.bf16 (!%p213_p2), %v1646_v9, %v1644_v8  ;;  %v1645_v12 = vld [vmem:[%s2414_s2 + $0x50] sm:$0xff] (!%p213_p2)  ;;  %v1648_v13 = vld [vmem:[%s2414_s2 + $0x68] sm:$0xff] (!%p213_p2)  ;;  %vm1376_vm1 = vcmask (!%p213_p2), 1043456   ;;  %vm2027_vm2 = vmmov (!%p213_p2), 1  }
   0x7   : > { %1777 = vmatprep.mubr.msk.f32.mxu0 (!%p213_p2), %vm260_vm0, %v256_v1  ;;  %v1643_v11 = vld [vmem:[%s2414_s2 + $0x40] sm:$0xff] (!%p213_p2)  ;;  %v1650_v14 = vld [vmem:[%s2414_s2 + $0x78] sm:$0xff] (!%p213_p2)  ;;  %v1636_v15 = vld [vmem:[%s2413_s1 + $0x28] sm:$0xff] (!%p213_p2)  ;;  %vm1369_vm4 = vcmask (!%p213_p2), 228352   ;;  %vm1481_vm5 = vcmask (!%p213_p2), 326656   ;;  %vm1563_vm6 = vcmask (!%p213_p2), 687104  }
   0x8   : > { %v257_v16 = vld [vmem:[%s2413_s1 + $0x8] sm:$0xff] (!%p213_p2)  ;;  %v1637_v17 = vld [vmem:[%s2413_s1 + $0x30] sm:$0xff] (!%p213_p2)  ;;  %v1857_v19 = vpack.c.bf16 (!%p213_p2), %v1645_v12, %v1643_v11  ;;  %v1859_v20 = vpack.c.bf16 (!%p213_p2), %v1650_v14, %v1648_v13  ;;  %v1647_v21 = vld [vmem:[%s2414_s2 + $0x60] sm:$0xff] (!%p213_p2)  ;;  %vm1565_vm7 = vcmask (!%p213_p2), 685056  }
   0x9   : > { %v258_v18 = vld [vmem:[%s2413_s1 + $0x10] sm:$0xff] (!%p213_p2)  ;;  %v1638_v23 = vld [vmem:[%s2413_s1 + $0x38] sm:$0xf] (!%p213_p2)  ;;  %v1659_v25 = vld [vmem:[%s2413_s1 + $0x40] sm:$0xff] (!%p213_p2) }
   0xa   : > { %v1649_v22 = vld [vmem:[%s2414_s2 + $0x70] sm:$0xff] (!%p213_p2)  ;;  %v259_v24 = vld [vmem:[%s2413_s1 + $0x18] sm:$0xf] (!%p213_p2)  ;;  %v1660_v27 = vld [vmem:[%s2413_s1 + $0x48] sm:$0xff] (!%p213_p2) }
   0xb   : > { %v1861_v26 = vpack.c.bf16 (!%p213_p2), %v1649_v22, %v1647_v21  ;;  %v1661_v28 = vld [vmem:[%s2413_s1 + $0x50] sm:$0xff] (!%p213_p2)  ;;  %v1662_v29 = vld [vmem:[%s2413_s1 + $0x58] sm:$0xf] (!%p213_p2)  ;;  %v1679_v30 = vld [vmem:[%s2413_s1 + $0x60] sm:$0xff] (!%p213_p2) }
   0xc   : > { %v1680_v31 = vld [vmem:[%s2413_s1 + $0x68] sm:$0xff] (!%p213_p2)  ;;  %v1681_v32 = vld [vmem:[%s2413_s1 + $0x70] sm:$0xff] (!%p213_p2)  ;;  %v1682_v33 = vld [vmem:[%s2413_s1 + $0x78] sm:$0xf] (!%p213_p2) }
   0xd   : > { %s2420_s22 = smov (!%p242_p3, %s1622_s22), 1  ;;  %v1699_v34 = vld [vmem:[%s2413_s1 + $0x80] sm:$0xff]  ;;  %v1700_v35 = vld [vmem:[%s2413_s1 + $0x88] sm:$0xff]  ;;  %v1701_v36 = vld [vmem:[%s2413_s1 + $0x90] sm:$0xff] }
   0xe   : > { %s1727_s27 = sshll.u32 %s2420_s22, 5  ;;  %v1702_v37 = vld [vmem:[%s2413_s1 + $0x98] sm:$0xf]  ;;  %v359_v39 = vld [vmem:[%s2414_s2 + $0x8] sm:$0xff]  ;;  %v358_v42 = vld [vmem:[%s2414_s2] sm:$0xff]  ;;  %s1728_s17 = sshll.u32 %s2420_s22, 4 }
   0xf   : > { %s246_s30 = scalar_lea.vmem %s2412_s0, %s1727_s27  ;;  %v361_v40 = vld [vmem:[%s2414_s2 + $0x18] sm:$0xff]  ;;  %v360_v43 = vld [vmem:[%s2414_s2 + $0x10] sm:$0xff]  ;;  %v363_v44 = vld [vmem:[%s2414_s2 + $0x28] sm:$0xff]  ;;  %s251_s20 = scalar_lea.vmem %s2418_s6, %s1728_s17 }
  0x10   : > { %v252_v2 = vld [vmem:[%s246_s30] sm:$0xff]  ;;  %v253_v3 = vld [vmem:[%s246_s30 + $0x8] sm:$0xff]  ;;  %v254_v4 = vld [vmem:[%s246_s30 + $0x10] sm:$0xff]  ;;  %v1863_v41 = vpack.c.bf16 %v361_v40, %v359_v39  ;;  %v1865_v46 = vpack.c.bf16 %v360_v43, %v358_v42 }
  0x11   : > { %v1839_v5 = vpack.c.bf16 %v253_v3, %v252_v2  ;;  %v255_v6 = vld [vmem:[%s246_s30 + $0x18] sm:$0xff]  ;;  %v362_v49 = vld [vmem:[%s2414_s2 + $0x20] sm:$0xff]  ;;  %v364_v50 = vld [vmem:[%s2414_s2 + $0x30] sm:$0xff] }
  0x12   : > { %v2086_v7 = vpack.c.bf16 %v255_v6, %v254_v4  ;;  %v365_v45 = vld [vmem:[%s2414_s2 + $0x38] sm:$0xff]  ;;  %v1668_v54 = vld [vmem:[%s2414_s2 + $0x88] sm:$0xff]  ;;  %v1869_v56 = vpack.c.bf16 %v364_v50, %v362_v49  ;;  %v1667_v0 = vld [vmem:[%s2414_s2 + $0x80] sm:$0xff] }
  0x13   : > { %1848 = vmatprep.subr.bf16.mxu1 %v1839_v5  ;;  %1840 = vmatprep.subr.bf16.mxu0 %v1839_v5  ;;  %v1867_v48 = vpack.c.bf16 %v365_v45, %v363_v44  ;;  %v1670_v55 = vld [vmem:[%s2414_s2 + $0x98] sm:$0xff]  ;;  %v1669_v1 = vld [vmem:[%s2414_s2 + $0x90] sm:$0xff]  ;;  %v1672_v2 = vld [vmem:[%s2414_s2 + $0xa8] sm:$0xff]  ;;  %v1341_v44 = vlaneseq }
  0x14   : > { %1850 = vmatpush3.bf16.msra.mxu1 %v1839_v5  ;;  %1842 = vmatpush3.bf16.msra.mxu0 %v1839_v5  ;;  %v1879_v58 = vpack.c.bf16 %v1670_v55, %v1668_v54  ;;  %v1674_v3 = vld [vmem:[%s2414_s2 + $0xb8] sm:$0xff]  ;;  %v1881_v6 = vpack.c.bf16 %v1669_v1, %v1667_v0  ;;  %v1671_v8 = vld [vmem:[%s2414_s2 + $0xa0] sm:$0xff]  ;;  %v1673_v9 = vld [vmem:[%s2414_s2 + $0xb0] sm:$0xff] }
  0x15   : > { %1852 = vmatprep.subr.bf16.mxu1 %v2086_v7  ;;  %1844 = vmatprep.subr.bf16.mxu0 %v2086_v7  ;;  %v1690_v11 = vld [vmem:[%s2414_s2 + $0xd8] sm:$0xff]  ;;  %v1885_v14 = vpack.c.bf16 %v1673_v9, %v1671_v8  ;;  %v1689_v21 = vld [vmem:[%s2414_s2 + $0xd0] sm:$0xff]  ;;  %v1692_v22 = vld [vmem:[%s2414_s2 + $0xe8] sm:$0xff]  ;;  %v1342_v45 = vshrl.u32 %v1341_v44, 7 }
  0x16   : > { %v1713_v42 = vld [vmem:[%s2414_s2 + $0x130] sm:$0xff]  ;;  %vm1924_vm3 = vmpackc.low %vm1376_vm1, %vm2027_vm2  ;;  %v1477_v44 = vld [vmem:[%s2417_s5 + $0x88] sm:$0xff] }
  0x18   : > { %1854 = vmatpush3.bf16.msra.mxu1 %v2086_v7  ;;  %1846 = vmatpush3.bf16.msra.mxu0 %v2086_v7 }
  0x19   : > { %1872 = vmatprep.subr.bf16.mxu1 %v1839_v5  ;;  %1856 = vmatprep.subr.bf16.mxu0 %v1855_v10  ;;  %v1688_v10 = vld [vmem:[%s2414_s2 + $0xc8] sm:$0xff] }
  0x1b   : > { %1792 = vmatmul.mubr.msk.f32.vlgmr.msra.gmra.mrb[0].mxu1 %vm260_vm0, %v1636_v15  ;;  %1778 = vmatmul.mubr.msk.f32.vlgmr.msra.gmra.mrb[0].mxu0 %vm260_vm0, %v257_v16  ;;  %v1895_v15 = vpack.c.bf16 %v1690_v11, %v1688_v10 }
  0x1c   : > { %1794 = vmatprep.mubr.msk.f32.mxu1 %vm260_vm0, %v1637_v17  ;;  %1780 = vmatprep.mubr.msk.f32.mxu0 %vm260_vm0, %v258_v18 }
  0x1d   : > { %1874 = vmatpush3.bf16.msra.mxu1 %v1839_v5  ;;  %1858 = vmatpush1.bf16.msra.mxu0 %v1857_v19 }
  0x1e   : > { %1876 = vmatprep.subr.bf16.mxu1 %v2086_v7  ;;  %1860 = vmatprep.subr.bf16.mxu0 %v1859_v20  ;;  %v1687_v20 = vld [vmem:[%s2414_s2 + $0xc0] sm:$0xff] }
  0x1f   : > { %1795 = vmatmul.mubr.msk.f32.gmra.mrb[2].mxu1 %vm260_vm0, %v1638_v23  ;;  %1781 = vmatmul.mubr.msk.f32.gmra.mrb[2].mxu0 %vm260_vm0, %v259_v24  ;;  %v1694_v23 = vld [vmem:[%s2414_s2 + $0xf8] sm:$0xff] }
  0x20   : > { %1805 = vmatprep.mubr.msk.f32.mxu1 %vm260_vm0, %v1659_v25  ;;  %553 = vmatprep.mubr.f32.mxu0 %v2026_v38 }
  0x21   : > { %1878 = vmatpush3.bf16.msra.mxu1 %v2086_v7  ;;  %1862 = vmatpush1.bf16.msra.mxu0 %v1861_v26  ;;  %v1897_v26 = vpack.c.bf16 %v1689_v21, %v1687_v20  ;;  %v1462_v20 = vld [vmem:[%s2417_s5 + $0x10] sm:$0xff]  ;;  %v1463_v21 = vld [vmem:[%s2417_s5 + $0x18] sm:$0xff] }
  0x22   : > { %1888 = vmatprep.subr.bf16.mxu1 %v1839_v5  ;;  %1864 = vmatprep.subr.bf16.mxu0 %v1863_v41  ;;  %v1711_v41 = vld [vmem:[%s2414_s2 + $0x120] sm:$0xff] }
  0x23   : > { %v1917_v43 = vpack.c.bf16 %v1713_v42, %v1711_v41  ;;  %v1475_v41 = vld [vmem:[%s2417_s5 + $0x78] sm:$0xff] }
  0x24   : > { %1806 = vmatmul.mubr.msk.f32.vlgmr.msra.gmra.mrb[4].mxu1 %vm260_vm0, %v1660_v27  ;;  %v1899_v27 = vpack.c.bf16 %v1694_v23, %v1692_v22  ;;  %v1368_v22 = vld [vmem:[%s2416_s4 + $0x8] sm:$0x3f]  ;;  %v1933_v23 = vpack.c.bf16 %v1463_v21, %v1462_v20 }
  0x25   : > { %1808 = vmatprep.mubr.msk.f32.mxu1 %vm260_vm0, %v1661_v28  ;;  %1890 = vmatpush3.bf16.msra.mxu1 %v1839_v5  ;;  %v1691_v28 = vld [vmem:[%s2414_s2 + $0xe0] sm:$0xff] }
  0x26   : > { %1892 = vmatprep.subr.bf16.mxu1 %v2086_v7 }
  0x28   : > { %1809 = vmatmul.mubr.msk.f32.gmra.mrb[6].mxu1 %vm260_vm0, %v1662_v29  ;;  %v1693_v29 = vld [vmem:[%s2414_s2 + $0xf0] sm:$0xff] }
  0x29   : > { %1894 = vmatpush3.bf16.msra.mxu1 %v2086_v7  ;;  %1819 = vmatprep.mubr.msk.f32.mxu1 %vm260_vm0, %v1679_v30  ;;  %v1708_v30 = vld [vmem:[%s2414_s2 + $0x108] sm:$0xff] }
  0x2a   : > { %1904 = vmatprep.subr.bf16.mxu1 %v1839_v5 }
  0x2c   : > { %1820 = vmatmul.mubr.msk.f32.vlgmr.msra.gmra.mrb[8].mxu1 %vm260_vm0, %v1680_v31  ;;  %v1710_v31 = vld [vmem:[%s2414_s2 + $0x118] sm:$0xff] }
  0x2d   : > { %1822 = vmatprep.mubr.msk.f32.mxu1 %vm260_vm0, %v1681_v32  ;;  %1906 = vmatpush3.bf16.msra.mxu1 %v1839_v5  ;;  %v1901_v32 = vpack.c.bf16 %v1693_v29, %v1691_v28  ;;  %v1467_v28 = vld [vmem:[%s2417_s5 + $0x38] sm:$0xff] }
  0x2e   : > { %1908 = vmatprep.subr.bf16.mxu1 %v2086_v7 }
  0x30   : > { %1823 = vmatmul.mubr.msk.f32.gmra.mrb[10].mxu1 %vm260_vm0, %v1682_v33  ;;  %v1911_v33 = vpack.c.bf16 %v1710_v31, %v1708_v30  ;;  %v1468_v30 = vld [vmem:[%s2417_s5 + $0x40] sm:$0xff]  ;;  %v1469_v31 = vld [vmem:[%s2417_s5 + $0x48] sm:$0xff] }
  0x31   : > { %1910 = vmatpush3.bf16.msra.mxu1 %v2086_v7  ;;  %1833 = vmatprep.mubr.msk.f32.mxu1 %vm260_vm0, %v1699_v34  ;;  %v1883_v7 = vpack.c.bf16 %v1674_v3, %v1672_v2  ;;  %v1707_v34 = vld [vmem:[%s2414_s2 + $0x100] sm:$0xff] }
  0x34   : > { %1834 = vmatmul.mubr.msk.f32.vlgmr.msra.gmra.mrb[12].mxu1 %vm260_vm0, %v1700_v35  ;;  %v1709_v35 = vld [vmem:[%s2414_s2 + $0x110] sm:$0xff] }
  0x35   : > { %1836 = vmatprep.mubr.msk.f32.mxu1 %vm260_vm0, %v1701_v36  ;;  %v1712_v36 = vld [vmem:[%s2414_s2 + $0x128] sm:$0xff]  ;;  %v1913_v39 = vpack.c.bf16 %v1709_v35, %v1707_v34  ;;  %v1471_v34 = vld [vmem:[%s2417_s5 + $0x58] sm:$0xff] }
  0x38   : > { %1837 = vmatmul.mubr.msk.f32.gmra.mrb[14].mxu1 %vm260_vm0, %v1702_v37  ;;  %v1714_v37 = vld [vmem:[%s2414_s2 + $0x138] sm:$0xff] }
  0x39   : > { %1447 = vmatprep.mubr.f32.mxu1 %v2026_v38  ;;  %v1915_v40 = vpack.c.bf16 %v1714_v37, %v1712_v36  ;;  %v1472_v36 = vld [vmem:[%s2417_s5 + $0x60] sm:$0xff]  ;;  %v1473_v37 = vld [vmem:[%s2417_s5 + $0x68] sm:$0xff] }
  0xee   : > { %v1793_v47 = vpop.f32.mrb[0].mxu1  ;;  %v1779_v51 = vpop.f32.mrb[0].mxu0 }
  0xef   : > { %v449_v52 = vpop.f32.mrb[1].mxu1  ;;  %v339_v53 = vpop.f32.mrb[1].mxu0 }
  0xf0   : > { %1651 = vmatmul.mubr.msk.f32.vlgmr.msra.gmra.mrb[4].mxu0 %vm260_vm0, %v449_v52 }
  0xf1   : > { %1866 = vmatpush1.bf16.msra.mxu0 %v1865_v46  ;;  %559 = vmatprep.mubr.f32.mxu0 %v2026_v38  ;;  %v1343_v46 = vsub.s32 0, %v1342_v45 }
  0xf2   : > { %v1796_v57 = vpop.f32.mrb[2].mxu1  ;;  %1868 = vmatprep.subr.bf16.mxu0 %v1867_v48  ;;  %v1782_v59 = vpop.f32.mrb[2].mxu0  ;;  %v1347_v48 = vsub.s32 1, %v1342_v45 }
  0xf3   : > { %v459_v60 = vpop.f32.mrb[3].mxu1  ;;  %v349_v61 = vpop.f32.mrb[3].mxu0 }
  0xf4   : > { %1652 = vmatmul.mubr.msk.f32.gmra.mrb[6].mxu0 %vm260_vm0, %v1793_v47  ;;  %v1339_v47 = vld [vmem:[%s2415_s3] sm:$0x3] }
  0xf5   : > { %565 = vmatprep.mubr.f32.mxu0 %v2026_v38  ;;  %1870 = vmatpush1.bf16.msra.mxu0 %v1869_v56  ;;  %v1344_v49 = vrot.slane %v1339_v47, %v1343_v46  ;;  %v1348_v50 = vrot.slane %v1339_v47, %v1347_v48  ;;  %v1478_v46 = vld [vmem:[%s2417_s5 + $0x90] sm:$0xff]  ;;  %v1479_v47 = vld [vmem:[%s2417_s5 + $0x98] sm:$0xff] }
  0xf6   : > { %1880 = vmatprep.subr.bf16.mxu0 %v1879_v58  ;;  %v1957_v48 = vpack.c.bf16 %v1479_v47, %v1478_v46 }
  0xf7   : > { %v1807_v62 = vpop.f32.mrb[4].mxu1 }
  0xf8   : > { %1653 = vmatmul.mubr.msk.f32.gmra.mrb[8].mxu0 %vm260_vm0, %v459_v60  ;;  %v762_v63 = vpop.f32.mrb[5].mxu1 }
  0xf9   : > { %571 = vmatprep.mubr.f32.mxu0 %v2026_v38 }
  0xfb   : > { %v1810_v4 = vpop.f32.mrb[6].mxu1 }
  0xfc   : > { %1654 = vmatmul.mubr.msk.f32.gmra.mrb[10].mxu0 %vm260_vm0, %v1796_v57  ;;  %v772_v5 = vpop.f32.mrb[7].mxu1 }
  0xfd   : > { %654 = vmatprep.mubr.f32.mxu0 %v2026_v38 }
  0xff   : > { %v1821_v12 = vpop.f32.mrb[8].mxu1 }
 0x100   : > { %1655 = vmatmul.mubr.msk.f32.vlgmr.msra.gmra.mrb[4].mxu0 %vm260_vm0, %v339_v53  ;;  %v982_v13 = vpop.f32.mrb[9].mxu1 }
 0x101   : > { %1882 = vmatpush1.bf16.msra.mxu0 %v1881_v6  ;;  %660 = vmatprep.mubr.f32.mxu0 %v2026_v38 }
 0x102   : > { %1884 = vmatprep.subr.bf16.mxu0 %v1883_v7 }
 0x103   : > { %v1824_v16 = vpop.f32.mrb[10].mxu1 }
 0x104   : > { %1656 = vmatmul.mubr.msk.f32.gmra.mrb[6].mxu0 %vm260_vm0, %v1779_v51  ;;  %v992_v17 = vpop.f32.mrb[11].mxu1 }
 0x105   : > { %666 = vmatprep.mubr.f32.mxu0 %v2026_v38  ;;  %1886 = vmatpush1.bf16.msra.mxu0 %v1885_v14 }
 0x106   : > { %1896 = vmatprep.subr.bf16.mxu0 %v1895_v15  ;;  %v1460_v15 = vld [vmem:[%s2417_s5] sm:$0xff] }
 0x107   : > { %v1835_v18 = vpop.f32.mrb[12].mxu1 }
 0x108   : > { %1657 = vmatmul.mubr.msk.f32.gmra.mrb[8].mxu0 %vm260_vm0, %v349_v61  ;;  %v1202_v19 = vpop.f32.mrb[13].mxu1 }
 0x109   : > { %672 = vmatprep.mubr.f32.mxu0 %v2026_v38 }
 0x10b   : > { %v1838_v24 = vpop.f32.mrb[14].mxu1 }
 0x10c   : > { %1658 = vmatmul.mubr.msk.f32.gmra.mrb[10].mxu0 %vm260_vm0, %v1782_v59  ;;  %v1212_v25 = vpop.f32.mrb[15].mxu1 }
 0x10d   : > { %866 = vmatprep.mubr.f32.mxu0 %v2026_v38 }
 0x110   : > { %1675 = vmatmul.mubr.msk.f32.vlgmr.msra.gmra.mrb[4].mxu0 %vm260_vm0, %v762_v63 }
 0x111   : > { %1898 = vmatpush1.bf16.msra.mxu0 %v1897_v26  ;;  %872 = vmatprep.mubr.f32.mxu0 %v2026_v38 }
 0x112   : > { %1900 = vmatprep.subr.bf16.mxu0 %v1899_v27  ;;  %v1466_v27 = vld [vmem:[%s2417_s5 + $0x30] sm:$0xff] }
 0x113   : > { %v1939_v29 = vpack.c.bf16 %v1467_v28, %v1466_v27 }
 0x114   : > { %1676 = vmatmul.mubr.msk.f32.gmra.mrb[6].mxu0 %vm260_vm0, %v1807_v62 }
 0x115   : > { %878 = vmatprep.mubr.f32.mxu0 %v2026_v38  ;;  %1902 = vmatpush1.bf16.msra.mxu0 %v1901_v32  ;;  %v1942_v32 = vpack.c.bf16 %v1469_v31, %v1468_v30 }
 0x116   : > { %1912 = vmatprep.subr.bf16.mxu0 %v1911_v33  ;;  %v1470_v33 = vld [vmem:[%s2417_s5 + $0x50] sm:$0xff] }
 0x117   : > { %v1945_v35 = vpack.c.bf16 %v1471_v34, %v1470_v33 }
 0x118   : > { %1677 = vmatmul.mubr.msk.f32.gmra.mrb[8].mxu0 %vm260_vm0, %v772_v5 }
 0x119   : > { %884 = vmatprep.mubr.f32.mxu0 %v2026_v38 }
 0x11c   : > { %1678 = vmatmul.mubr.msk.f32.gmra.mrb[10].mxu0 %vm260_vm0, %v1810_v4 }
 0x11d   : > { %1086 = vmatprep.mubr.f32.mxu0 %v2026_v38 }
 0x120   : > { %1695 = vmatmul.mubr.msk.f32.vlgmr.msra.gmra.mrb[4].mxu0 %vm260_vm0, %v982_v13 }
 0x121   : > { %1914 = vmatpush1.bf16.msra.mxu0 %v1913_v39  ;;  %1092 = vmatprep.mubr.f32.mxu0 %v2026_v38  ;;  %v1948_v39 = vpack.c.bf16 %v1473_v37, %v1472_v36 }
 0x122   : > { %1916 = vmatprep.subr.bf16.mxu0 %v1915_v40  ;;  %v1474_v40 = vld [vmem:[%s2417_s5 + $0x70] sm:$0xff] }
 0x123   : > { %v1951_v42 = vpack.c.bf16 %v1475_v41, %v1474_v40 }
 0x124   : > { %1696 = vmatmul.mubr.msk.f32.gmra.mrb[6].mxu0 %vm260_vm0, %v1821_v12 }
 0x125   : > { %1098 = vmatprep.mubr.f32.mxu0 %v2026_v38  ;;  %1918 = vmatpush1.bf16.msra.mxu0 %v1917_v43  ;;  %v1476_v43 = vld [vmem:[%s2417_s5 + $0x80] sm:$0xff] }
 0x126   : > { %v1954_v45 = vpack.c.bf16 %v1477_v44, %v1476_v43 }
 0x128   : > { %1697 = vmatmul.mubr.msk.f32.gmra.mrb[8].mxu0 %vm260_vm0, %v992_v17  ;;  %v1367_v17 = vld [vmem:[%s2416_s4] sm:$0xff] }
 0x129   : > { %1104 = vmatprep.mubr.f32.mxu0 %v2026_v38 }
 0x12c   : > { %1698 = vmatmul.mubr.msk.f32.gmra.mrb[10].mxu0 %vm260_vm0, %v1824_v16  ;;  %v1461_v16 = vld [vmem:[%s2417_s5 + $0x8] sm:$0xff] }
 0x12d   : > { %1306 = vmatprep.mubr.f32.mxu0 %v2026_v38 }
 0x130   : > { %1715 = vmatmul.mubr.msk.f32.vlgmr.msra.gmra.mrb[4].mxu0 %vm260_vm0, %v1202_v19  ;;  %v2028_v19 = vmov 0.0|0.0  }
 0x131   : > { %1312 = vmatprep.mubr.f32.mxu0 %v2026_v38 }
 0x134   : > { %1716 = vmatmul.mubr.msk.f32.gmra.mrb[6].mxu0 %vm260_vm0, %v1835_v18  ;;  %v1930_v18 = vpack.c.bf16 %v1461_v16, %v1460_v15 }
 0x135   : > { %1318 = vmatprep.mubr.f32.mxu0 %v2026_v38 }
 0x138   : > { %1717 = vmatmul.mubr.msk.f32.gmra.mrb[8].mxu0 %vm260_vm0, %v1212_v25  ;;  %v1465_v25 = vld [vmem:[%s2417_s5 + $0x28] sm:$0xff] }
 0x139   : > { %1324 = vmatprep.mubr.f32.mxu0 %v2026_v38 }
 0x13c   : > { %1718 = vmatmul.mubr.msk.f32.gmra.mrb[10].mxu0 %vm260_vm0, %v1838_v24  ;;  %v1464_v24 = vld [vmem:[%s2417_s5 + $0x20] sm:$0xff] }
 0x13d   : > { %v1936_v26 = vpack.c.bf16 %v1465_v25, %v1464_v24 }
 0x203   : > { %v1308_v51 = vpop.f32.mrb[4].mxu0 }
 0x204   : > { %v1351_v52 = vadd.f32 %v1344_v49, %v1308_v51  ;;  %v1310_v53 = vpop.f32.mrb[5].mxu0 }
 0x205   : > { %v1352_v54 = vadd.f32 %v1348_v50, %v1310_v53 }
 0x206   : > { %2002 = vtanh.f32 %v1351_v52 }
 0x207   : > { %v1314_v55 = vpop.f32.mrb[6].mxu0  ;;  %2004 = vtanh.f32 %v1352_v54 }
 0x208   : > { %v1353_v56 = vadd.f32 %v1344_v49, %v1314_v55  ;;  %v1316_v57 = vpop.f32.mrb[7].mxu0 }
 0x209   : > { %v1354_v58 = vadd.f32 %v1348_v50, %v1316_v57 }
 0x20a   : > { %2006 = vtanh.f32 %v1353_v56 }
 0x20b   : > { %2008 = vtanh.f32 %v1354_v58  ;;  %v1320_v59 = vpop.f32.mrb[8].mxu0 }
 0x20c   : > { %v1355_v60 = vadd.f32 %v1344_v49, %v1320_v59  ;;  %v1322_v61 = vpop.f32.mrb[9].mxu0 }
 0x20d   : > { %v1356_v62 = vadd.f32 %v1348_v50, %v1322_v61 }
 0x20e   : > { %2010 = vtanh.f32 %v1355_v60 }
 0x20f   : > { %v1326_v63 = vpop.f32.mrb[10].mxu0  ;;  %2012 = vtanh.f32 %v1356_v62 }
 0x210   : > { %v1357_v0 = vadd.f32 %v1344_v49, %v1326_v63  ;;  %v1328_v1 = vpop.f32.mrb[11].mxu0  ;;  %v2003_v3 = vpop.eup %2002  ;;  %v1480_v49 = vld [vmem:[%s2417_s5 + $0xa0] sm:$0xff] }
 0x211   : > { %v1358_v2 = vadd.f32 %v1348_v50, %v1328_v1  ;;  %v2005_v4 = vpop.eup %2004 }
 0x212   : > { %2014 = vtanh.f32 %v1357_v0 }
 0x213   : > { %2016 = vtanh.f32 %v1358_v2 }
 0x214   : > { %v2007_v5 = vpop.eup %2006 }
 0x215   : > { %v2009_v6 = vpop.eup %2008  ;;  %v1921_v7 = vpack.c.bf16 %v2007_v5, %v2003_v3 }
 0x216   : > { %v1919_v8 = vpack.c.bf16 %v2009_v6, %v2005_v4 }
 0x218   : > { %1920 = vmatprep.subr.bf16.mxu1 %v1919_v8  ;;  %v2011_v9 = vpop.eup %2010 }
 0x219   : > { %1922 = vmatpush1.bf16.msra.mxu1 %v1921_v7  ;;  %v2013_v10 = vpop.eup %2012 }
 0x21c   : > { %v2015_v11 = vpop.eup %2014 }
 0x21d   : > { %v2017_v12 = vpop.eup %2016  ;;  %v1926_v13 = vpack.c.bf16 %v2015_v11, %v2011_v9 }
 0x21e   : > { %v1923_v14 = vpack.c.bf16 %v2017_v12, %v2013_v10 }
 0x220   : > { %1925 = vmatprep.subr.msk.bf16.mxu1 %vm1924_vm3, %v1923_v14 }
 0x221   : > { %1928 = vmatpush1.bf16.msk.msra.mxu1 %vm1924_vm3, %v1926_v13 }
 0x222   : > { %1929 = vmatprep.subr.bf16.mxu1 %v2028_v19 }
 0x224   : > { %1721 = vmatmul.mubr.msk.f32.vlgmr.msra.gmra.mrb[16].mxu1 %vm1369_vm4, %v1367_v17 }
 0x225   : > { %1453 = vmatprep.mubr.f32.mxu1 %v2026_v38  ;;  %1931 = vmatpush1.bf16.msra.mxu1 %v1930_v18 }
 0x226   : > { %1932 = vmatprep.subr.bf16.mxu1 %v2028_v19 }
 0x228   : > { %1722 = vmatmul.mubr.msk.f32.gmra.mrb[18].mxu1 %vm1369_vm4, %v1368_v22 }
 0x229   : > { %1934 = vmatpush1.bf16.msra.mxu1 %v1933_v23 }
 0x22a   : > { %1935 = vmatprep.subr.bf16.mxu1 %v2028_v19 }
 0x22d   : > { %1937 = vmatpush1.bf16.msra.mxu1 %v1936_v26 }
 0x22e   : > { %1938 = vmatprep.subr.bf16.mxu1 %v2028_v19 }
 0x231   : > { %1940 = vmatpush1.bf16.msra.mxu1 %v1939_v29 }
 0x232   : > { %1941 = vmatprep.subr.bf16.mxu1 %v2028_v19 }
 0x235   : > { %1943 = vmatpush1.bf16.msra.mxu1 %v1942_v32 }
 0x236   : > { %1944 = vmatprep.subr.bf16.mxu1 %v2028_v19 }
 0x239   : > { %1946 = vmatpush1.bf16.msra.mxu1 %v1945_v35 }
 0x23a   : > { %1947 = vmatprep.subr.bf16.mxu1 %v2028_v19 }
 0x23d   : > { %1949 = vmatpush1.bf16.msra.mxu1 %v1948_v39 }
 0x23e   : > { %1950 = vmatprep.subr.bf16.mxu1 %v2028_v19 }
 0x241   : > { %1952 = vmatpush1.bf16.msra.mxu1 %v1951_v42 }
 0x242   : > { %1953 = vmatprep.subr.bf16.mxu1 %v2028_v19 }
 0x245   : > { %1955 = vmatpush1.bf16.msra.mxu1 %v1954_v45 }
 0x246   : > { %1956 = vmatprep.subr.bf16.mxu1 %v2028_v19 }
 0x249   : > { %1958 = vmatpush1.bf16.msra.mxu1 %v1957_v48 }
 0x24a   : > { %1528 = vmatprep.subr.mxu1 %v2026_v38 }
 0x24d   : > { %1529 = vmatpush1.msra.mxu1 %v1480_v49 }
 0x2f7   : > { %v1449_v50 = vpop.f32.mrb[16].mxu1 }
 0x2f8   : > { %v1451_v51 = vpop.f32.mrb[17].mxu1 }
 0x2f9   : > { %1723 = vmatprep.mubr.msk.f32.mxu1 %vm1481_vm5, %v1451_v51 }
 0x2fa   : > { %1553 = vmatmul.mubr.f32.vlgmr.msra.gmra.mrb[20].mxu1 %v1449_v50 }
 0x2fb   : > { %v1455_v52 = vpop.f32.mrb[18].mxu1 }
 0x2fc   : > { %v1457_v53 = vpop.f32.mrb[19].mxu1 }
 0x2fd   : > { %1724 = vmatprep.mubr.msk.f32.mxu1 %vm1481_vm5, %v1457_v53 }
 0x2fe   : > { %1558 = vmatmul.mubr.f32.gmra.mrb[22].mxu1 %v1455_v52 }
 0x3cd   : > { %v1554_v38 = vpop.f32.mrb[20].mxu1 }
 0x3ce   : > { %1564 = vst.msk [vmem:[%s251_s20] sm:$0xff] %vm1563_vm6, %v1554_v38  ;;  %v1556_v54 = vpop.f32.mrb[21].mxu1 }
 0x3d1   : > { %v1559_v55 = vpop.f32.mrb[22].mxu1 }
 0x3d2   : > { %1566 = vst.msk [vmem:[%s251_s20 + $0x8] sm:$0x3f] %vm1565_vm7, %v1559_v55  ;;  %v1561_v56 = vpop.f32.mrb[23].mxu1 }
 0x3d3 PF: > { %s16_s21 = sadd.s32 1, %s2024_s21  }
 0x3d4   : > { %p13_p4 = scmp.ge.s32.totalorder %s16_s21, 4  }
 0x3d6   :  { %15 = sbr.rel (!%p13_p4) target bundleno = 1 (0x1), region = 82 }

// kernel: lenet_forward.4
= control target key start
LH: loop header
LB: loop body
LE: loop exit
PB: predicated region body
PF: predicated region fallthrough
CT: control target
= control target key end

     0   :  { %s1949_s21 = smov 0   ;;  %s2494_s0 = inlined_call_operand.vmem [shape: f32[2,14,84], index: 0, kind: input, shape index: {}]   ;;  %s2495_s1 = inlined_call_operand.vmem [shape: f32[5,10,14], index: 1, kind: input, shape index: {}]   ;;  %s2496_s2 = inlined_call_operand.vmem [shape: f32[5,84,160], index: 2, kind: input, shape index: {}]   ;;  %s2497_s3 = inlined_call_operand.vmem [shape: f32[1,160], index: 3, kind: input, shape index: {}]   ;;  %s2498_s4 = inlined_call_operand.vmem [shape: f32[5,10], index: 4, kind: input, shape index: {}]   ;;  %s2499_s5 = inlined_call_operand.vmem [shape: f32[160,80], index: 5, kind: input, shape index: {}]   ;;  %s2500_s6 = inlined_call_operand.vmem [shape: f32[2,5,80], index: 6, kind: output, shape index: {}]  }
   0x1 LB: > { %s1501_s22 = sadd.s32 4294967295, %s1909_s21   ;;  %p1505_p0 = scmp.ge.s32.totalorder %s1909_s21, 1  ;;  %s1909_s21 = sphi %s1949_s21, %s16_s21  }
   0x2   : > { %p212_p1 = scmp.lt.s32.totalorder %s1909_s21, 3 }
   0x4   : > { %p213_p2 = pnand %p1505_p0, %p212_p1 }
   0x5   : > { %p241_p3 = scmp.lt.s32.totalorder (!%p213_p2), %s1501_s22, 1  ;;  %v252_v0 = vld [vmem:[%s2495_s1] sm:$0xff] (!%p213_p2)  ;;  %vm254_vm0 = vcmask (!%p213_p2), 113664   ;;  %v341_v1 = vld [vmem:[%s2496_s2 + $0x8] sm:$0xff] (!%p213_p2)  ;;  %v343_v2 = vld [vmem:[%s2496_s2 + $0x18] sm:$0xff] (!%p213_p2)  ;;  %vm261_vm1 = vcmask (!%p213_p2), 1045504  }
   0x6   : > { %216 = sbr.rel (%p213_p2) target bundleno = 1170 (0x492), region = 44  ;;  %1671 = vmatprep.mubr.msk.f32.mxu1 (!%p213_p2), %vm254_vm0, %v252_v0  ;;  %v340_v3 = vld [vmem:[%s2496_s2] sm:$0xff] (!%p213_p2)  ;;  %v1734_v4 = vpack.c.bf16 (!%p213_p2), %v343_v2, %v341_v1  ;;  %v342_v5 = vld [vmem:[%s2496_s2 + $0x10] sm:$0xff] (!%p213_p2)  ;;  %v345_v7 = vld [vmem:[%s2496_s2 + $0x28] sm:$0xff] (!%p213_p2)  ;;  %vm1911_vm2 = vmmov (!%p213_p2), 1   ;;  %vm476_vm4 = vcmask (!%p213_p2), 1043456  }
   0x7   : > { %v1736_v6 = vpack.c.bf16 (!%p213_p2), %v342_v5, %v340_v3  ;;  %v347_v8 = vld [vmem:[%s2496_s2 + $0x38] sm:$0xff] (!%p213_p2)  ;;  %v344_v10 = vld [vmem:[%s2496_s2 + $0x20] sm:$0xff] (!%p213_p2)  ;;  %v346_v11 = vld [vmem:[%s2496_s2 + $0x30] sm:$0xff] (!%p213_p2)  ;;  %vm469_vm5 = vcmask (!%p213_p2), 687104   ;;  %vm1274_vm6 = vcmask (!%p213_p2), 1041408   ;;  %vm1270_vm8 = vcmask (!%p213_p2), 80896  }
   0x8   : > { %1735 = vmatprep.subr.bf16.mxu0 (!%p213_p2), %v1734_v4  ;;  %v1738_v9 = vpack.c.bf16 (!%p213_p2), %v347_v8, %v345_v7  ;;  %vm1993_vm3 = vmpackc.low (!%p213_p2), %vm261_vm1, %vm1911_vm2  ;;  %v1740_v15 = vpack.c.bf16 (!%p213_p2), %v346_v11, %v344_v10  ;;  %v349_v17 = vld [vmem:[%s2496_s2 + $0x48] sm:$0xff] (!%p213_p2)  ;;  %v351_v18 = vld [vmem:[%s2496_s2 + $0x58] sm:$0xff] (!%p213_p2)  ;;  %vm1372_vm9 = vcmask (!%p213_p2), 261120   ;;  %vm1446_vm10 = vcmask (!%p213_p2), 651264  }
   0x9   : > { %1737 = vmatpush1.bf16.msra.mxu0 (!%p213_p2), %v1736_v6  ;;  %v1518_v19 = vld [vmem:[%s2496_s2 + $0xb8] sm:$0xff] (!%p213_p2)  ;;  %v1520_v20 = vld [vmem:[%s2496_s2 + $0xc8] sm:$0xff] (!%p213_p2)  ;;  %v1742_v21 = vpack.c.bf16 (!%p213_p2), %v351_v18, %v349_v17  ;;  %v348_v22 = vld [vmem:[%s2496_s2 + $0x40] sm:$0xff] (!%p213_p2)  ;;  %v1912_v6 = vmov (!%p213_p2), 0.0  }
   0xa   : > { %1739 = vmatprep.subr.bf16.mxu0 (!%p213_p2), %v1738_v9  ;;  %v1512_v23 = vld [vmem:[%s2495_s1 + $0x10] sm:$0xff] (!%p213_p2)  ;;  %v253_v25 = vld [vmem:[%s2495_s1 + $0x8] sm:$0x3] (!%p213_p2)  ;;  %v355_v27 = vld [vmem:[%s2496_s2 + $0x78] sm:$0xff] (!%p213_p2)  ;;  %v1714_v28 = vpack.c.bf16 (!%p213_p2), %v1520_v20, %v1518_v19  ;;  %636 = vmatprep.mubr.f32.mxu0 (!%p213_p2), %v1912_v6 }
   0xb   : > { %v350_v24 = vld [vmem:[%s2496_s2 + $0x50] sm:$0xff] (!%p213_p2)  ;;  %v353_v26 = vld [vmem:[%s2496_s2 + $0x68] sm:$0xff] (!%p213_p2)  ;;  %v1519_v30 = vld [vmem:[%s2496_s2 + $0xc0] sm:$0xff] (!%p213_p2) }
   0xc   : > { %v1517_v29 = vld [vmem:[%s2496_s2 + $0xb0] sm:$0xff] (!%p213_p2)  ;;  %v1522_v31 = vld [vmem:[%s2496_s2 + $0xd8] sm:$0xff] (!%p213_p2)  ;;  %v1744_v32 = vpack.c.bf16 (!%p213_p2), %v350_v24, %v348_v22  ;;  %v1524_v33 = vld [vmem:[%s2496_s2 + $0xe8] sm:$0xff] (!%p213_p2)  ;;  %v1746_v34 = vpack.c.bf16 (!%p213_p2), %v355_v27, %v353_v26 }
   0xd   : > { %s2504_s22 = smov (!%p241_p3, %s1501_s22), 1  ;;  %1741 = vmatpush1.bf16.msra.mxu0 %v1740_v15  ;;  %v352_v35 = vld [vmem:[%s2496_s2 + $0x60] sm:$0xff]  ;;  %v354_v36 = vld [vmem:[%s2496_s2 + $0x70] sm:$0xff]  ;;  %v357_v37 = vld [vmem:[%s2496_s2 + $0x88] sm:$0xff]  ;;  %v1716_v40 = vpack.c.bf16 %v1519_v30, %v1517_v29  ;;  %v1718_v41 = vpack.c.bf16 %v1524_v33, %v1522_v31 }
   0xe   : > { %s1646_s9 = sshll.u32 %s2504_s22, 4  ;;  %1743 = vmatprep.subr.bf16.mxu0 %v1742_v21  ;;  %v359_v38 = vld [vmem:[%s2496_s2 + $0x98] sm:$0xff]  ;;  %v1521_v42 = vld [vmem:[%s2496_s2 + $0xd0] sm:$0xff]  ;;  %v1523_v43 = vld [vmem:[%s2496_s2 + $0xe0] sm:$0xff]  ;;  %v1748_v45 = vpack.c.bf16 %v354_v36, %v352_v35  ;;  %s1508_s25 = sshll.u32 %s2504_s22, 3 }
   0xf   : > { %s245_s16 = scalar_lea.vmem %s2494_s0, %s1646_s9  ;;  %v1513_v39 = vld [vmem:[%s2495_s1 + $0x18] sm:$0x3]  ;;  %v1528_v46 = vld [vmem:[%s2496_s2 + $0x108] sm:$0xff]  ;;  %v1750_v47 = vpack.c.bf16 %v359_v38, %v357_v37  ;;  %v356_v48 = vld [vmem:[%s2496_s2 + $0x80] sm:$0xff]  ;;  %v1720_v50 = vpack.c.bf16 %v1523_v43, %v1521_v42  ;;  %s249_s28 = scalar_lea.vmem %s2500_s6, %s1508_s25 }
  0x10   : > { %v250_v12 = vld [vmem:[%s245_s16] sm:$0xff]  ;;  %v251_v13 = vld [vmem:[%s245_s16 + $0x8] sm:$0x3f]  ;;  %v1526_v44 = vld [vmem:[%s2496_s2 + $0xf8] sm:$0xff] }
  0x11   : > { %v1997_v16 = vpack.c.bf16 %v251_v13, %v250_v12  ;;  %1745 = vmatpush1.bf16.msra.mxu0 %v1744_v32  ;;  %v358_v49 = vld [vmem:[%s2496_s2 + $0x90] sm:$0xff]  ;;  %v1722_v51 = vpack.c.bf16 %v1528_v46, %v1526_v44  ;;  %v1527_v53 = vld [vmem:[%s2496_s2 + $0x100] sm:$0xff]  ;;  %v1530_v55 = vld [vmem:[%s2496_s2 + $0x118] sm:$0xff] }
  0x12   : > { %1747 = vmatprep.subr.bf16.mxu0 %v1746_v34  ;;  %v1525_v52 = vld [vmem:[%s2496_s2 + $0xf0] sm:$0xff]  ;;  %v1752_v54 = vpack.c.bf16 %v358_v49, %v356_v48  ;;  %v1532_v56 = vld [vmem:[%s2496_s2 + $0x128] sm:$0xff]  ;;  %v1531_v60 = vld [vmem:[%s2496_s2 + $0x120] sm:$0xff] }
  0x13   : > { %1704 = vmatprep.subr.msk.bf16.mxu1 %vm1993_vm3, %v1997_v16  ;;  %v1724_v57 = vpack.c.bf16 %v1527_v53, %v1525_v52  ;;  %v1726_v58 = vpack.c.bf16 %v1532_v56, %v1530_v55  ;;  %v1529_v59 = vld [vmem:[%s2496_s2 + $0x110] sm:$0xff]  ;;  %v1534_v62 = vld [vmem:[%s2496_s2 + $0x138] sm:$0xff]  ;;  %v1536_v63 = vld [vmem:[%s2496_s2 + $0x148] sm:$0xff] }
  0x14   : > { %1707 = vmatpush3.bf16.msk.msra.mxu1 %vm1993_vm3, %v1997_v16  ;;  %v1728_v61 = vpack.c.bf16 %v1531_v60, %v1529_v59  ;;  %v1730_v0 = vpack.c.bf16 %v1536_v63, %v1534_v62  ;;  %v1533_v1 = vld [vmem:[%s2496_s2 + $0x130] sm:$0xff]  ;;  %v1535_v2 = vld [vmem:[%s2496_s2 + $0x140] sm:$0xff]  ;;  %v361_v3 = vld [vmem:[%s2496_s2 + $0xa8] sm:$0xf] }
  0x15   : > { %1710 = vmatprep.subr.msk.bf16.mxu1 %vm1993_vm3, %v1997_v16  ;;  %1749 = vmatpush1.bf16.msra.mxu0 %v1748_v45  ;;  %v1732_v4 = vpack.c.bf16 %v1535_v2, %v1533_v1  ;;  %v360_v5 = vld [vmem:[%s2496_s2 + $0xa0] sm:$0xf]  ;;  %v1538_v7 = vld [vmem:[%s2496_s2 + $0x158] sm:$0xf]  ;;  %v1537_v8 = vld [vmem:[%s2496_s2 + $0x150] sm:$0xf] }
  0x16   : > { %1751 = vmatprep.subr.bf16.mxu0 %v1750_v47  ;;  %v1553_v9 = vld [vmem:[%s2496_s2 + $0x168] sm:$0xff]  ;;  %v1555_v10 = vld [vmem:[%s2496_s2 + $0x178] sm:$0xff]  ;;  %v1552_v12 = vld [vmem:[%s2496_s2 + $0x160] sm:$0xff] }
  0x17   : > { %1672 = vmatmul.mubr.msk.f32.vlgmr.msra.gmra.mrb[0].mxu1 %vm254_vm0, %v253_v25  ;;  %v1760_v11 = vpack.c.bf16 %v1555_v10, %v1553_v9  ;;  %v1554_v13 = vld [vmem:[%s2496_s2 + $0x170] sm:$0xff]  ;;  %v1557_v15 = vld [vmem:[%s2496_s2 + $0x188] sm:$0xff]  ;;  %v1559_v17 = vld [vmem:[%s2496_s2 + $0x198] sm:$0xff] }
  0x18   : > { %1713 = vmatpush3.bf16.msk.msra.mxu1 %vm1993_vm3, %v1997_v16  ;;  %1678 = vmatprep.mubr.msk.f32.mxu1 %vm254_vm0, %v1512_v23  ;;  %v1762_v18 = vpack.c.bf16 %v1554_v13, %v1552_v12  ;;  %v1764_v20 = vpack.c.bf16 %v1559_v17, %v1557_v15  ;;  %v1556_v22 = vld [vmem:[%s2496_s2 + $0x180] sm:$0xff]  ;;  %v1558_v23 = vld [vmem:[%s2496_s2 + $0x190] sm:$0xff]  ;;  %v1561_v24 = vld [vmem:[%s2496_s2 + $0x1a8] sm:$0xff] }
  0x19   : > { %1715 = vmatprep.subr.bf16.mxu1 %v1714_v28  ;;  %1753 = vmatpush1.bf16.msra.mxu0 %v1752_v54  ;;  %v1563_v25 = vld [vmem:[%s2496_s2 + $0x1b8] sm:$0xff]  ;;  %v1766_v27 = vpack.c.bf16 %v1558_v23, %v1556_v22  ;;  %v1560_v30 = vld [vmem:[%s2496_s2 + $0x1a0] sm:$0xff]  ;;  %v1562_v31 = vld [vmem:[%s2496_s2 + $0x1b0] sm:$0xff] }
  0x1a   : > { %1543 = vmatprep.subr.msk.mxu0 %vm476_vm4, %v361_v3  ;;  %v1768_v29 = vpack.c.bf16 %v1563_v25, %v1561_v24  ;;  %v1565_v32 = vld [vmem:[%s2496_s2 + $0x1c8] sm:$0xff]  ;;  %v1567_v33 = vld [vmem:[%s2496_s2 + $0x1d8] sm:$0xff]  ;;  %v1547_v34 = vld [vmem:[%s2495_s1 + $0x20] sm:$0xff]  ;;  %v1770_v35 = vpack.c.bf16 %v1562_v31, %v1560_v30 }
  0x1b   : > { %1679 = vmatmul.mubr.msk.f32.vlgmr.msra.gmra.mrb[2].mxu1 %vm254_vm0, %v1513_v39  ;;  %v1772_v36 = vpack.c.bf16 %v1567_v33, %v1565_v32  ;;  %v1548_v37 = vld [vmem:[%s2495_s1 + $0x28] sm:$0x3]  ;;  %v1578_v38 = vld [vmem:[%s2495_s1 + $0x30] sm:$0xff]  ;;  %v1579_v39 = vld [vmem:[%s2495_s1 + $0x38] sm:$0x3] }
  0x1c   : > { %1717 = vmatpush1.bf16.msra.mxu1 %v1716_v40  ;;  %547 = vmatprep.mubr.f32.mxu1 %v1912_v6  ;;  %v1609_v40 = vld [vmem:[%s2495_s1 + $0x40] sm:$0xff]  ;;  %v1566_v43 = vld [vmem:[%s2496_s2 + $0x1d0] sm:$0xff]  ;;  %v1571_v44 = vld [vmem:[%s2496_s2 + $0x1f8] sm:$0xff] }
  0x1d   : > { %1719 = vmatprep.subr.bf16.mxu1 %v1718_v41  ;;  %1544 = vmatpush1.msk.msra.mxu0 %vm476_vm4, %v360_v5  ;;  %v1610_v41 = vld [vmem:[%s2495_s1 + $0x48] sm:$0x3]  ;;  %v1564_v42 = vld [vmem:[%s2496_s2 + $0x1c0] sm:$0xff]  ;;  %v1570_v47 = vld [vmem:[%s2496_s2 + $0x1f0] sm:$0xff] }
  0x1e   : > { %1761 = vmatprep.subr.bf16.mxu0 %v1760_v11  ;;  %v1774_v14 = vpack.c.bf16 %v1566_v43, %v1564_v42  ;;  %v1568_v46 = vld [vmem:[%s2496_s2 + $0x1e0] sm:$0xff]  ;;  %v1573_v49 = vld [vmem:[%s2496_s2 + $0x208] sm:$0xf]  ;;  %v1588_v60 = vld [vmem:[%s2496_s2 + $0x238] sm:$0xff] }
  0x1f   : > { %v1778_v48 = vpack.c.bf16 %v1570_v47, %v1568_v46  ;;  %v1572_v52 = vld [vmem:[%s2496_s2 + $0x200] sm:$0xf]  ;;  %v1587_v1 = vld [vmem:[%s2496_s2 + $0x230] sm:$0xff]  ;;  %v1594_v5 = vld [vmem:[%s2496_s2 + $0x268] sm:$0xff] }
  0x20   : > { %1721 = vmatpush1.bf16.msra.mxu1 %v1720_v50  ;;  %v1584_v50 = vld [vmem:[%s2496_s2 + $0x218] sm:$0xff]  ;;  %v1589_v2 = vld [vmem:[%s2496_s2 + $0x240] sm:$0xff]  ;;  %v1591_v9 = vld [vmem:[%s2496_s2 + $0x250] sm:$0xff] }
  0x21   : > { %1723 = vmatprep.subr.bf16.mxu1 %v1722_v51  ;;  %v1586_v51 = vld [vmem:[%s2496_s2 + $0x228] sm:$0xff]  ;;  %v1593_v10 = vld [vmem:[%s2496_s2 + $0x260] sm:$0xff]  ;;  %v1596_v12 = vld [vmem:[%s2496_s2 + $0x278] sm:$0xff] }
  0x22   : > { %v1786_v53 = vpack.c.bf16 %v1586_v51, %v1584_v50  ;;  %v1598_v13 = vld [vmem:[%s2496_s2 + $0x288] sm:$0xff]  ;;  %v1796_v17 = vpack.c.bf16 %v1593_v10, %v1591_v9  ;;  %v1600_v22 = vld [vmem:[%s2496_s2 + $0x298] sm:$0xff]  ;;  %v1614_v33 = vld [vmem:[%s2496_s2 + $0x2c0] sm:$0xff] }
  0x23   : > { %v1602_v23 = vld [vmem:[%s2496_s2 + $0x2a8] sm:$0xff]  ;;  %v1604_v30 = vld [vmem:[%s2496_s2 + $0x2b8] sm:$0xf]  ;;  %v1620_v42 = vld [vmem:[%s2496_s2 + $0x2f0] sm:$0xff] }
  0x24   : > { %1725 = vmatpush1.bf16.msra.mxu1 %v1724_v57  ;;  %v1583_v57 = vld [vmem:[%s2496_s2 + $0x210] sm:$0xff]  ;;  %v1615_v31 = vld [vmem:[%s2496_s2 + $0x2c8] sm:$0xff]  ;;  %v1617_v32 = vld [vmem:[%s2496_s2 + $0x2d8] sm:$0xff] }
  0x25   : > { %1727 = vmatprep.subr.bf16.mxu1 %v1726_v58  ;;  %v1585_v58 = vld [vmem:[%s2496_s2 + $0x220] sm:$0xff]  ;;  %v1623_v43 = vld [vmem:[%s2496_s2 + $0x308] sm:$0xff]  ;;  %v1624_v46 = vld [vmem:[%s2496_s2 + $0x310] sm:$0xff] }
  0x26   : > { %v1788_v62 = vpack.c.bf16 %v1585_v58, %v1583_v57  ;;  %v1627_v47 = vld [vmem:[%s2496_s2 + $0x328] sm:$0xff]  ;;  %v1626_v51 = vld [vmem:[%s2496_s2 + $0x320] sm:$0xff]  ;;  %v1633_v57 = vld [vmem:[%s2496_s2 + $0x358] sm:$0xff] }
  0x27   : > { %vm1833_vm7 = vmpackc.low %vm1274_vm6, %vm1911_vm2 }
  0x28   : > { %1729 = vmatpush1.bf16.msra.mxu1 %v1728_v61  ;;  %v1590_v61 = vld [vmem:[%s2496_s2 + $0x248] sm:$0xff] }
  0x29   : > { %1731 = vmatprep.subr.bf16.mxu1 %v1730_v0  ;;  %v1790_v0 = vpack.c.bf16 %v1590_v61, %v1588_v60  ;;  %v1630_v61 = vld [vmem:[%s2496_s2 + $0x340] sm:$0xff] }
  0x2c   : > { %1733 = vmatpush1.bf16.msra.mxu1 %v1732_v4  ;;  %v1592_v4 = vld [vmem:[%s2496_s2 + $0x258] sm:$0xff] }
  0x2d   : > { %1539 = vmatprep.subr.msk.mxu1 %vm476_vm4, %v1538_v7  ;;  %v1792_v7 = vpack.c.bf16 %v1589_v2, %v1587_v1  ;;  %v1634_v1 = vld [vmem:[%s2496_s2 + $0x360] sm:$0xf]  ;;  %v1251_v2 = vlaneseq }
  0x30   : > { %1540 = vmatpush1.msk.msra.mxu1 %vm476_vm4, %v1537_v8  ;;  %v1794_v8 = vpack.c.bf16 %v1594_v5, %v1592_v4  ;;  %v1249_v5 = vld [vmem:[%s2497_s3] sm:$0x3] }
  0x31   : > { %1756 = vmatprep.subr.msk.bf16.mxu1 %vm1993_vm3, %v1997_v16 }
  0xea   : > { %v1673_v19 = vpop.f32.mrb[0].mxu1 }
  0xeb   : > { %v331_v21 = vpop.f32.mrb[1].mxu1 }
  0xec   : > { %1545 = vmatmul.mubr.msk.f32.vlgmr.msra.gmra.mrb[0].mxu0 %vm469_vm5, %v331_v21 }
  0xed   : > { %642 = vmatprep.mubr.f32.mxu0 %v1912_v6  ;;  %1763 = vmatpush1.bf16.msra.mxu0 %v1762_v18  ;;  %v1798_v18 = vpack.c.bf16 %v1598_v13, %v1596_v12 }
  0xee   : > { %v1680_v26 = vpop.f32.mrb[2].mxu1  ;;  %1765 = vmatprep.subr.bf16.mxu0 %v1764_v20  ;;  %v1597_v20 = vld [vmem:[%s2496_s2 + $0x280] sm:$0xff] }
  0xef   : > { %v437_v28 = vpop.f32.mrb[3].mxu1 }
  0xf0   : > { %1541 = vmatmul.mubr.msk.f32.vlgmr.msra.gmra.mrb[4].mxu1 %vm469_vm5, %v437_v28  ;;  %1546 = vmatmul.mubr.msk.f32.gmra.mrb[2].mxu0 %vm469_vm5, %v1673_v19  ;;  %v1595_v19 = vld [vmem:[%s2496_s2 + $0x270] sm:$0xff]  ;;  %v1601_v28 = vld [vmem:[%s2496_s2 + $0x2a0] sm:$0xff] }
  0xf1   : > { %1759 = vmatpush3.bf16.msk.msra.mxu1 %vm1993_vm3, %v1997_v16  ;;  %553 = vmatprep.mubr.f32.mxu1 %v1912_v6  ;;  %v1800_v25 = vpack.c.bf16 %v1597_v20, %v1595_v19 }
  0xf2   : > { %1782 = vmatprep.subr.msk.bf16.mxu1 %vm1993_vm3, %v1997_v16  ;;  %1767 = vmatpush1.bf16.msra.mxu0 %v1766_v27  ;;  %v1599_v27 = vld [vmem:[%s2496_s2 + $0x290] sm:$0xff] }
  0xf3   : > { %1769 = vmatprep.subr.bf16.mxu0 %v1768_v29  ;;  %832 = vmatprep.mubr.f32.mxu0 %v1912_v6  ;;  %v1804_v29 = vpack.c.bf16 %v1601_v28, %v1599_v27  ;;  %v1269_v27 = vld [vmem:[%s2498_s4] sm:$0x1f] }
  0xf4   : > { %1542 = vmatmul.mubr.msk.f32.gmra.mrb[6].mxu1 %vm469_vm5, %v1680_v26  ;;  %v1802_v26 = vpack.c.bf16 %v1602_v23, %v1600_v22 }
  0xf5   : > { %1685 = vmatprep.mubr.msk.f32.mxu1 %vm254_vm0, %v1547_v34  ;;  %v1616_v34 = vld [vmem:[%s2496_s2 + $0x2d0] sm:$0xff] }
  0xf6   : > { %1771 = vmatpush1.bf16.msra.mxu0 %v1770_v35  ;;  %v1619_v35 = vld [vmem:[%s2496_s2 + $0x2e8] sm:$0xff] }
  0xf7   : > { %1773 = vmatprep.subr.bf16.mxu0 %v1772_v36  ;;  %v1621_v36 = vld [vmem:[%s2496_s2 + $0x2f8] sm:$0xff] }
  0xf8   : > { %1686 = vmatmul.mubr.msk.f32.vlgmr.msra.gmra.mrb[8].mxu1 %vm254_vm0, %v1548_v37  ;;  %v1603_v37 = vld [vmem:[%s2496_s2 + $0x2b0] sm:$0xf] }
  0xf9   : > { %1785 = vmatpush3.bf16.msk.msra.mxu1 %vm1993_vm3, %v1997_v16  ;;  %1692 = vmatprep.mubr.msk.f32.mxu1 %vm254_vm0, %v1578_v38  ;;  %v1812_v38 = vpack.c.bf16 %v1617_v32, %v1615_v31  ;;  %v1355_v31 = vld [vmem:[%s2499_s5 + $0x18] sm:$0xff] }
  0xfa   : > { %1808 = vmatprep.subr.msk.bf16.mxu1 %vm1993_vm3, %v1997_v16  ;;  %1775 = vmatpush1.bf16.msra.mxu0 %v1774_v14  ;;  %v1625_v14 = vld [vmem:[%s2496_s2 + $0x318] sm:$0xff] }
  0xfc   : > { %1693 = vmatmul.mubr.msk.f32.vlgmr.msra.gmra.mrb[10].mxu1 %vm254_vm0, %v1579_v39  ;;  %v1814_v39 = vpack.c.bf16 %v1616_v34, %v1614_v33  ;;  %v1356_v33 = vld [vmem:[%s2499_s5 + $0x20] sm:$0xff]  ;;  %v1357_v34 = vld [vmem:[%s2499_s5 + $0x28] sm:$0xff] }
  0xfd   : > { %1811 = vmatpush3.bf16.msk.msra.mxu1 %vm1993_vm3, %v1997_v16  ;;  %1699 = vmatprep.mubr.msk.f32.mxu1 %vm254_vm0, %v1609_v40  ;;  %v1569_v16 = vld [vmem:[%s2496_s2 + $0x1e8] sm:$0xff]  ;;  %v1816_v40 = vpack.c.bf16 %v1621_v36, %v1619_v35  ;;  %v1845_v35 = vpack.c.bf16 %v1357_v34, %v1356_v33  ;;  %v1358_v36 = vld [vmem:[%s2499_s5 + $0x30] sm:$0xff] }
  0xfe   : > { %v1776_v45 = vpack.c.bf16 %v1571_v44, %v1569_v16  ;;  %v1820_v44 = vpack.c.bf16 %v1625_v14, %v1623_v43  ;;  %v1363_v43 = vld [vmem:[%s2499_s5 + $0x58] sm:$0xff] }
 0x100   : > { %1700 = vmatmul.mubr.msk.f32.vlgmr.msra.gmra.mrb[12].mxu1 %vm254_vm0, %v1610_v41  ;;  %1777 = vmatprep.subr.bf16.mxu0 %v1776_v45  ;;  %v1618_v41 = vld [vmem:[%s2496_s2 + $0x2e0] sm:$0xff] }
 0x101   : > { %1345 = vmatprep.mubr.f32.mxu1 %v1912_v6  ;;  %1779 = vmatpush1.bf16.msra.mxu0 %v1778_v48  ;;  %v1818_v16 = vpack.c.bf16 %v1620_v42, %v1618_v41  ;;  %v1622_v45 = vld [vmem:[%s2496_s2 + $0x300] sm:$0xff]  ;;  %v1629_v48 = vld [vmem:[%s2496_s2 + $0x338] sm:$0xff]  ;;  %v1362_v42 = vld [vmem:[%s2499_s5 + $0x50] sm:$0xff] }
 0x102   : > { %1574 = vmatprep.subr.msk.mxu0 %vm476_vm4, %v1573_v49  ;;  %v1822_v49 = vpack.c.bf16 %v1624_v46, %v1622_v45  ;;  %v1824_v50 = vpack.c.bf16 %v1629_v48, %v1627_v47  ;;  %v1854_v14 = vpack.c.bf16 %v1363_v43, %v1362_v42  ;;  %v1366_v46 = vld [vmem:[%s2499_s5 + $0x70] sm:$0xff]  ;;  %v1367_v47 = vld [vmem:[%s2499_s5 + $0x78] sm:$0xff] }
 0x103   : > { %v1860_v48 = vpack.c.bf16 %v1367_v47, %v1366_v46 }
 0x105   : > { %1575 = vmatpush1.msk.msra.mxu0 %vm476_vm4, %v1572_v52  ;;  %v1628_v52 = vld [vmem:[%s2496_s2 + $0x330] sm:$0xff] }
 0x106   : > { %1787 = vmatprep.subr.bf16.mxu0 %v1786_v53  ;;  %v1631_v53 = vld [vmem:[%s2496_s2 + $0x348] sm:$0xff]  ;;  %v1826_v58 = vpack.c.bf16 %v1628_v52, %v1626_v51  ;;  %v1370_v52 = vld [vmem:[%s2499_s5 + $0x90] sm:$0xff] }
 0x107   : > { %v1828_v60 = vpack.c.bf16 %v1633_v57, %v1631_v53  ;;  %v1371_v53 = vld [vmem:[%s2499_s5 + $0x98] sm:$0xff] }
 0x108   : > { %v1866_v57 = vpack.c.bf16 %v1371_v53, %v1370_v52 }
 0x1c3   : > { %v2261_v54 = vpop.f32.mrb[4].mxu1 }
 0x1c4   : > { %v2263_v55 = vpop.f32.mrb[5].mxu1 }
 0x1c7   : > { %v2265_v56 = vpop.f32.mrb[6].mxu1 }
 0x1c8   : > { %v2273_v59 = vpop.f32.mrb[7].mxu1 }
 0x1cb   : > { %v1687_v63 = vpop.f32.mrb[8].mxu1 }
 0x1cc   : > { %v724_v3 = vpop.f32.mrb[9].mxu1 }
 0x1cd   : > { %1576 = vmatmul.mubr.msk.f32.vlgmr.msra.gmra.mrb[0].mxu0 %vm469_vm5, %v724_v3  ;;  %v1252_v3 = vshrl.u32 %v1251_v2, 7 }
 0x1ce   : > { %1789 = vmatpush1.bf16.msra.mxu0 %v1788_v62  ;;  %838 = vmatprep.mubr.f32.mxu0 %v1912_v6  ;;  %v1632_v62 = vld [vmem:[%s2496_s2 + $0x350] sm:$0xff] }
 0x1cf   : > { %1791 = vmatprep.subr.bf16.mxu0 %v1790_v0  ;;  %v1694_v11 = vpop.f32.mrb[10].mxu1  ;;  %v1635_v0 = vld [vmem:[%s2496_s2 + $0x368] sm:$0xf]  ;;  %v1253_v4 = vsub.s32 0, %v1252_v3 }
 0x1d0   : > { %v924_v15 = vpop.f32.mrb[11].mxu1 }
 0x1d1   : > { %1577 = vmatmul.mubr.msk.f32.gmra.mrb[2].mxu0 %vm469_vm5, %v1687_v63  ;;  %v1830_v63 = vpack.c.bf16 %v1632_v62, %v1630_v61 }
 0x1d2   : > { %1793 = vmatpush1.bf16.msra.mxu0 %v1792_v7  ;;  %1032 = vmatprep.mubr.f32.mxu0 %v1912_v6  ;;  %v1257_v7 = vsub.s32 1, %v1252_v3 }
 0x1d3   : > { %1795 = vmatprep.subr.bf16.mxu0 %v1794_v8  ;;  %v2315_v21 = vpop.f32.mrb[12].mxu1  ;;  %v1254_v8 = vrot.slane %v1249_v5, %v1253_v4 }
 0x1d4   : > { %v2323_v24 = vpop.f32.mrb[13].mxu1  ;;  %v1258_v10 = vrot.slane %v1249_v5, %v1257_v7 }
 0x1d6   : > { %1797 = vmatpush1.bf16.msra.mxu0 %v1796_v17 }
 0x1d7   : > { %1799 = vmatprep.subr.bf16.mxu0 %v1798_v18 }
 0x1da   : > { %1801 = vmatpush1.bf16.msra.mxu0 %v1800_v25 }
 0x1db   : > { %1803 = vmatprep.subr.bf16.mxu0 %v1802_v26 }
 0x1de   : > { %1805 = vmatpush1.bf16.msra.mxu0 %v1804_v29  ;;  %v1913_v29 = vmov 0.0|0.0  }
 0x1df   : > { %1605 = vmatprep.subr.msk.mxu0 %vm476_vm4, %v1604_v30  ;;  %v1354_v30 = vld [vmem:[%s2499_s5 + $0x10] sm:$0xff] }
 0x1e0   : > { %v1842_v32 = vpack.c.bf16 %v1355_v31, %v1354_v30 }
 0x1e2   : > { %1606 = vmatpush1.msk.msra.mxu0 %vm476_vm4, %v1603_v37  ;;  %v1359_v37 = vld [vmem:[%s2499_s5 + $0x38] sm:$0xff] }
 0x1e3   : > { %1607 = vmatmul.mubr.msk.f32.vlgmr.msra.gmra.mrb[0].mxu0 %vm469_vm5, %v924_v15  ;;  %1813 = vmatprep.subr.bf16.mxu0 %v1812_v38  ;;  %v1848_v38 = vpack.c.bf16 %v1359_v37, %v1358_v36 }
 0x1e4   : > { %1815 = vmatpush1.bf16.msra.mxu0 %v1814_v39  ;;  %1038 = vmatprep.mubr.f32.mxu0 %v1912_v6  ;;  %v1360_v39 = vld [vmem:[%s2499_s5 + $0x40] sm:$0xff] }
 0x1e5   : > { %1817 = vmatprep.subr.bf16.mxu0 %v1816_v40  ;;  %v1361_v40 = vld [vmem:[%s2499_s5 + $0x48] sm:$0xff] }
 0x1e6   : > { %v1851_v41 = vpack.c.bf16 %v1361_v40, %v1360_v39 }
 0x1e7   : > { %1608 = vmatmul.mubr.msk.f32.gmra.mrb[2].mxu0 %vm469_vm5, %v1694_v11 }
 0x1e8   : > { %1819 = vmatpush1.bf16.msra.mxu0 %v1818_v16  ;;  %1232 = vmatprep.mubr.f32.mxu0 %v1912_v6  ;;  %v1364_v16 = vld [vmem:[%s2499_s5 + $0x60] sm:$0xff] }
 0x1e9   : > { %1821 = vmatprep.subr.bf16.mxu0 %v1820_v44  ;;  %v1365_v44 = vld [vmem:[%s2499_s5 + $0x68] sm:$0xff] }
 0x1ea   : > { %v1857_v45 = vpack.c.bf16 %v1365_v44, %v1364_v16 }
 0x1ec   : > { %1823 = vmatpush1.bf16.msra.mxu0 %v1822_v49  ;;  %v1368_v49 = vld [vmem:[%s2499_s5 + $0x80] sm:$0xff] }
 0x1ed   : > { %1825 = vmatprep.subr.bf16.mxu0 %v1824_v50  ;;  %v1369_v50 = vld [vmem:[%s2499_s5 + $0x88] sm:$0xff] }
 0x1ee   : > { %v1863_v51 = vpack.c.bf16 %v1369_v50, %v1368_v49 }
 0x1f0   : > { %1827 = vmatpush1.bf16.msra.mxu0 %v1826_v58 }
 0x1f1   : > { %1829 = vmatprep.subr.bf16.mxu0 %v1828_v60 }
 0x1f4   : > { %1831 = vmatpush1.bf16.msra.mxu0 %v1830_v63 }
 0x1f5   : > { %1636 = vmatprep.subr.msk.mxu0 %vm476_vm4, %v1635_v0 }
 0x1f8   : > { %1637 = vmatpush1.msk.msra.mxu0 %vm476_vm4, %v1634_v1 }
 0x1f9   : > { %1638 = vmatmul.mubr.msk.f32.vlgmr.msra.gmra.mrb[0].mxu0 %vm469_vm5, %v2323_v24 }
 0x1fa   : > { %1238 = vmatprep.mubr.f32.mxu0 %v1912_v6 }
 0x1fd   : > { %1639 = vmatmul.mubr.msk.f32.gmra.mrb[2].mxu0 %vm469_vm5, %v2315_v21 }
 0x2cc   : > { %v1234_v9 = vpop.f32.mrb[0].mxu0 }
 0x2cd   : > { %v1868_v11 = vadd.f32 %v1234_v9, %v2261_v54  ;;  %v1236_v12 = vpop.f32.mrb[1].mxu0 }
 0x2ce   : > { %v1869_v13 = vadd.f32 %v1236_v12, %v2263_v55 }
 0x2cf   : > { %v1261_v6 = vadd.f32 %v1868_v11, %v1254_v8 }
 0x2d0   : > { %v1262_v15 = vadd.f32 %v1869_v13, %v1258_v10  ;;  %v1240_v17 = vpop.f32.mrb[2].mxu0 }
 0x2d1   : > { %v1870_v18 = vadd.f32 %v1240_v17, %v2265_v56  ;;  %v1242_v19 = vpop.f32.mrb[3].mxu0  ;;  %1895 = vtanh.f32 %v1261_v6  ;;  %v1352_v56 = vld [vmem:[%s2499_s5] sm:$0xff] }
 0x2d2   : > { %v1871_v20 = vadd.f32 %v1242_v19, %v2273_v59  ;;  %1897 = vtanh.f32 %v1262_v15  ;;  %v1353_v59 = vld [vmem:[%s2499_s5 + $0x8] sm:$0xff] }
 0x2d3   : > { %v1263_v21 = vadd.f32 %v1870_v18, %v1254_v8  ;;  %v1839_v28 = vpack.c.bf16 %v1353_v59, %v1352_v56 }
 0x2d4   : > { %v1264_v22 = vadd.f32 %v1871_v20, %v1258_v10 }
 0x2d5   : > { %1899 = vtanh.f32 %v1263_v21 }
 0x2d6   : > { %1901 = vtanh.f32 %v1264_v22 }
 0x2db   : > { %v1896_v23 = vpop.eup %1895 }
 0x2dc   : > { %v1898_v54 = vpop.eup %1897 }
 0x2df   : > { %v1900_v24 = vpop.eup %1899 }
 0x2e0   : > { %v1902_v25 = vpop.eup %1901  ;;  %v1835_v55 = vpack.c.bf16 %v1900_v24, %v1896_v23 }
 0x2e1   : > { %v1832_v26 = vpack.c.bf16 %v1902_v25, %v1898_v54 }
 0x2e3   : > { %1834 = vmatprep.subr.msk.bf16.mxu1 %vm1833_vm7, %v1832_v26 }
 0x2e4   : > { %1837 = vmatpush1.bf16.msk.msra.mxu1 %vm1833_vm7, %v1835_v55 }
 0x2e5   : > { %1838 = vmatprep.subr.bf16.mxu1 %v1913_v29 }
 0x2e7   : > { %1642 = vmatmul.mubr.msk.f32.vlgmr.msra.gmra.mrb[14].mxu1 %vm1270_vm8, %v1269_v27 }
 0x2e8   : > { %1840 = vmatpush1.bf16.msra.mxu1 %v1839_v28 }
 0x2e9   : > { %1841 = vmatprep.subr.bf16.mxu1 %v1913_v29 }
 0x2ec   : > { %1843 = vmatpush1.bf16.msra.mxu1 %v1842_v32 }
 0x2ed   : > { %1844 = vmatprep.subr.bf16.mxu1 %v1913_v29 }
 0x2f0   : > { %1846 = vmatpush1.bf16.msra.mxu1 %v1845_v35 }
 0x2f1   : > { %1847 = vmatprep.subr.bf16.mxu1 %v1913_v29 }
 0x2f4   : > { %1849 = vmatpush1.bf16.msra.mxu1 %v1848_v38 }
 0x2f5   : > { %1850 = vmatprep.subr.bf16.mxu1 %v1913_v29 }
 0x2f8   : > { %1852 = vmatpush1.bf16.msra.mxu1 %v1851_v41 }
 0x2f9   : > { %1853 = vmatprep.subr.bf16.mxu1 %v1913_v29 }
 0x2fc   : > { %1855 = vmatpush1.bf16.msra.mxu1 %v1854_v14 }
 0x2fd   : > { %1856 = vmatprep.subr.bf16.mxu1 %v1913_v29 }
 0x300   : > { %1858 = vmatpush1.bf16.msra.mxu1 %v1857_v45 }
 0x301   : > { %1859 = vmatprep.subr.bf16.mxu1 %v1913_v29 }
 0x304   : > { %1861 = vmatpush1.bf16.msra.mxu1 %v1860_v48 }
 0x305   : > { %1862 = vmatprep.subr.bf16.mxu1 %v1913_v29 }
 0x308   : > { %1864 = vmatpush1.bf16.msra.mxu1 %v1863_v51 }
 0x309   : > { %1865 = vmatprep.subr.bf16.mxu1 %v1913_v29 }
 0x30c   : > { %1867 = vmatpush1.bf16.msra.mxu1 %v1866_v57 }
 0x3ba   : > { %v1347_v58 = vpop.f32.mrb[14].mxu1 }
 0x3bb   : > { %v1349_v60 = vpop.f32.mrb[15].mxu1 }
 0x3bc   : > { %1643 = vmatprep.mubr.msk.f32.mxu1 %vm1372_vm9, %v1349_v60 }
 0x3bd   : > { %1441 = vmatmul.mubr.f32.vlgmr.msra.gmra.mrb[16].mxu1 %v1347_v58 }
 0x490   : > { %v1442_v61 = vpop.f32.mrb[16].mxu1 }
 0x491   : > { %1447 = vst.msk [vmem:[%s249_s28] sm:$0x1f] %vm1446_vm10, %v1442_v61  ;;  %v1444_v62 = vpop.f32.mrb[17].mxu1 }
 0x492 PF: > { %s16_s21 = sadd.s32 1, %s1909_s21  }
 0x493   : > { %p13_p4 = scmp.ge.s32.totalorder %s16_s21, 4  }
 0x495   :  { %15 = sbr.rel (!%p13_p4) target bundleno = 1 (0x1), region = 82 }

</bundles_post_ra>
